<compile_context>
chip_gen: v6e
topology: v6e:2x2x1
jax: 0.10.0
libtpu: 0.0.40
codegen_flags: <defaults>
</compile_context>

<pallas_src>
import jax
import jax.numpy as jnp
from jax.experimental import pallas as pl
from jax.experimental.pallas import tpu as pltpu

_LANES = 128


# ----------------------------- Pallas kernel --------------------------------
def _make_comp_att_kernel(parts_num, hidden_dim, n_acc=4):
    cin = parts_num * hidden_dim
    n_acc = max(1, min(n_acc, cin))

    def kernel(w_ref, b_ref, *refs):
        # w_ref: (cin,) f32 SMEM (scalar prefetch), b_ref: (1,) f32 SMEM.
        child_refs = refs[:parts_num]          # each (1, hidden_dim, TR, 128) VMEM
        out_ref = refs[parts_num]              # (1, 1, TR, 128) VMEM

        # 1x1 conv, single output channel == scalar-weighted channel sum.
        # Multiple partial accumulators break the VALU dependence chain.
        accs = [None] * n_acc
        for idx in range(cin):
            p, c = divmod(idx, hidden_dim)
            x = child_refs[p][0, c].astype(jnp.float32)      # (TR, 128), lane/sublane dense
            term = w_ref[idx] * x
            slot = idx % n_acc
            accs[slot] = term if accs[slot] is None else accs[slot] + term

        # Tree-sum the partial accumulators.
        live = [a for a in accs if a is not None]
        while len(live) > 1:
            nxt = [live[i] + live[i + 1] for i in range(0, len(live) - 1, 2)]
            if len(live) % 2:
                nxt.append(live[-1])
            live = nxt
        acc = live[0] + b_ref[0]

        # sigmoid(x) = 1 / (1 + exp(-x)); exp on EUP, exact reciprocal.
        out_ref[0, 0] = pl.reciprocal(1.0 + jnp.exp(-acc), approx=False).astype(
            out_ref.dtype)

    return kernel


# ------------------------------ tile picking ----------------------------------
def _pick_tile_rows(s_rows, batch, cin_total, budget_bytes):
    """Pick the spatial row-tile TR (rows of 128 lanes).

    TR is either a multiple of 8 (< s_rows) or the full extent s_rows, so the
    (8, 128) block constraint is always satisfied.  The double-buffered input
    blocks stay within `budget_bytes`, and when possible the grid keeps >= ~4
    steps so both v7x TensorCores get work (free on single-TC v5e/v6e).
    """
    row_bytes_db = 2 * cin_total * _LANES * 4        # double-buffered f32 input bytes / row
    cap = budget_bytes // max(row_bytes_db, 1)
    cap = max(8, (cap // 8) * 8)

    want_tiles = max(1, -(-4 // max(batch, 1)))      # ceil(4 / batch)
    tr_parallel = -(-s_rows // want_tiles)           # ceil(s_rows / want_tiles)
    tr_parallel = max(8, ((tr_parallel + 7) // 8) * 8)

    tr = min(cap, tr_parallel)
    if tr >= s_rows:
        return s_rows                                # full extent (always legal)
    return tr                                        # multiple of 8


def _vmem_budget_bytes():
    try:
        cap = int(pltpu.get_tpu_info().vmem_capacity_bytes)
    except Exception:
        cap = 64 * 1024 * 1024                       # conservative (v7x-sized) fallback
    # Cap well under physical VMEM so double-buffering survives on v7x's 64 MiB;
    # v5e/v6e (128 MiB) still get large tiles.
    budget = min(48 << 20, int(cap * 0.6))
    return budget, cap


# ------------------------------ JAX wrapper ----------------------------------
def comp_att_forward(child_list, weight, bias):
    """child_list: list of (B, hidden_dim, H, W) NCHW tensors.
    weight: (1, parts_num*hidden_dim, 1, 1) conv weight; bias: (1,).
    Returns sigmoid(conv1x1(cat(child_list, C))) of shape (B, 1, H, W)."""
    parts_num = len(child_list)
    B, hidden_dim, H, W = child_list[0].shape
    cin = parts_num * hidden_dim
    S = H * W
    s_pad = -(-S // _LANES) * _LANES
    s_rows = s_pad // _LANES

    # Flatten spatial onto a lane-dense (rows, 128) layout; free reshape for
    # contiguous NCHW, pad only when H*W is not a multiple of 128.
    flats = []
    for x in child_list:
        xf = x.reshape(B, hidden_dim, S)
        if s_pad != S:
            xf = jnp.pad(xf, ((0, 0), (0, 0), (0, s_pad - S)))
        flats.append(xf.reshape(B, hidden_dim, s_rows, _LANES))

    # Conv weight channel order matches cat(child_list, dim=1):
    # w_flat[p*hidden_dim + c] multiplies channel c of child p.
    w_flat = weight.reshape(cin).astype(jnp.float32)
    b1d = bias.reshape(1).astype(jnp.float32)

    budget, vmem_cap = _vmem_budget_bytes()
    tr = _pick_tile_rows(s_rows, B, cin, budget)
    n_t = -(-s_rows // tr)

    # Explicit scoped-VMEM limit so the larger double-buffered blocks compile
    # on v5e (16 MiB default) / v6e (32 MiB default), while staying under the
    # physical capacity on v7x.
    block_in_bytes = cin * tr * _LANES * 4
    needed = 2 * block_in_bytes + 2 * tr * _LANES * 4 + (1 << 20)
    vmem_limit = min(int(vmem_cap * 3 // 4), max(needed, 16 << 20))

    child_spec = pl.BlockSpec((1, hidden_dim, tr, _LANES),
                              lambda b, t, w, bb: (b, 0, t, 0))
    out_spec = pl.BlockSpec((1, 1, tr, _LANES),
                            lambda b, t, w, bb: (b, 0, t, 0))

    out4 = pl.pallas_call(
        _make_comp_att_kernel(parts_num, hidden_dim),
        out_shape=jax.ShapeDtypeStruct((B, 1, s_rows, _LANES), jnp.float32),
        grid_spec=pltpu.PrefetchScalarGridSpec(
            num_scalar_prefetch=2,
            grid=(B, n_t),
            in_specs=[child_spec] * parts_num,
            out_specs=out_spec,
        ),
        compiler_params=pltpu.CompilerParams(
            dimension_semantics=("parallel", "parallel"),
            vmem_limit_bytes=vmem_limit),
    )(w_flat, b1d, *flats)

    out = out4.reshape(B, 1, s_pad)
    if s_pad != S:
        out = out[:, :, :S]
    return out.reshape(B, 1, H, W)


# ----------------------------- pure-JAX reference -----------------------------
def comp_att_reference(child_list, weight, bias):
    x = jnp.concatenate(child_list, axis=1)                    # (B, Cin, H, W)
    w = weight.reshape(1, -1, 1, 1)
    y = jnp.sum(x * w, axis=1, keepdims=True) + bias.reshape(1, 1, 1, 1)
    return 1.0 / (1.0 + jnp.exp(-y))


# ---------------------------------- main --------------------------------------
if __name__ == "__main__":
    key = jax.random.PRNGKey(0)
    B, hidden_dim, parts_num = 2, 32, 4
    H, W = 16, 16

    keys = jax.random.split(key, parts_num + 2)
    child_list = [
        jax.random.normal(keys[p], (B, hidden_dim, H, W), jnp.float32)
        for p in range(parts_num)
    ]
    weight = 0.05 * jax.random.normal(
        keys[parts_num], (1, parts_num * hidden_dim, 1, 1), jnp.float32)
    bias = 0.1 * jax.random.normal(keys[parts_num + 1], (1,), jnp.float32)

    out = comp_att_forward(child_list, weight, bias)
    jax.block_until_ready(out)
    assert out.shape == (B, 1, H, W), out.shape

    ref = comp_att_reference(child_list, weight, bias)
    max_err = float(jnp.max(jnp.abs(out - ref)))
    assert max_err < 1e-4, max_err

    print("KERNEL_OK")
</pallas_src>

<mosaic_0001>
module attributes {stable_mosaic.version = 11 : i64} {
  func.func @kernel(%arg0: i32, %arg1: i32, %arg2: memref<128xf32, #tpu.memory_space<smem>>, %arg3: memref<1xf32, #tpu.memory_space<smem>>, %arg4: memref<1x32x2x128xf32, #tpu.memory_space<vmem>>, %arg5: memref<1x32x2x128xf32, #tpu.memory_space<vmem>>, %arg6: memref<1x32x2x128xf32, #tpu.memory_space<vmem>>, %arg7: memref<1x32x2x128xf32, #tpu.memory_space<vmem>>, %arg8: memref<1x1x2x128xf32, #tpu.memory_space<vmem>>) attributes {dimension_semantics = [#tpu.dimension_semantics<parallel>, #tpu.dimension_semantics<parallel>], iteration_bounds = array<i64: 2, 1>, scalar_prefetch = 2 : i64, scratch_operands = 0 : i64, tpu.core_type = #tpu.core_type<tc>, window_params = [{transform_indices = @transform_0, window_bounds = array<i64: 1, 32, 2, 128>}, {transform_indices = @transform_1, window_bounds = array<i64: 1, 32, 2, 128>}, {transform_indices = @transform_2, window_bounds = array<i64: 1, 32, 2, 128>}, {transform_indices = @transform_3, window_bounds = array<i64: 1, 32, 2, 128>}, {transform_indices = @transform_4, window_bounds = array<i64: 1, 1, 2, 128>}]} {
    %c0 = arith.constant 0 : index
    %c0_0 = arith.constant 0 : index
    %c0_1 = arith.constant 0 : index
    %c0_2 = arith.constant 0 : index
    %0 = vector.load %arg4[%c0, %c0_0, %c0_1, %c0_2] : memref<1x32x2x128xf32, #tpu.memory_space<vmem>>, vector<1x1x2x128xf32>
    %1 = vector.shape_cast %0 : vector<1x1x2x128xf32> to vector<2x128xf32>
    %c0_3 = arith.constant 0 : index
    %2 = memref.load %arg2[%c0_3] : memref<128xf32, #tpu.memory_space<smem>>
    %3 = vector.broadcast %2 : f32 to vector<2x128xf32>
    %4 = arith.mulf %3, %1 : vector<2x128xf32>
    %c0_4 = arith.constant 0 : index
    %c1 = arith.constant 1 : index
    %c0_5 = arith.constant 0 : index
    %c0_6 = arith.constant 0 : index
    %5 = vector.load %arg4[%c0_4, %c1, %c0_5, %c0_6] : memref<1x32x2x128xf32, #tpu.memory_space<vmem>>, vector<1x1x2x128xf32>
    %6 = vector.shape_cast %5 : vector<1x1x2x128xf32> to vector<2x128xf32>
    %c1_7 = arith.constant 1 : index
    %7 = memref.load %arg2[%c1_7] : memref<128xf32, #tpu.memory_space<smem>>
    %8 = vector.broadcast %7 : f32 to vector<2x128xf32>
    %9 = arith.mulf %8, %6 : vector<2x128xf32>
    %c0_8 = arith.constant 0 : index
    %c2 = arith.constant 2 : index
    %c0_9 = arith.constant 0 : index
    %c0_10 = arith.constant 0 : index
    %10 = vector.load %arg4[%c0_8, %c2, %c0_9, %c0_10] : memref<1x32x2x128xf32, #tpu.memory_space<vmem>>, vector<1x1x2x128xf32>
    %11 = vector.shape_cast %10 : vector<1x1x2x128xf32> to vector<2x128xf32>
    %c2_11 = arith.constant 2 : index
    %12 = memref.load %arg2[%c2_11] : memref<128xf32, #tpu.memory_space<smem>>
    %13 = vector.broadcast %12 : f32 to vector<2x128xf32>
    %14 = arith.mulf %13, %11 : vector<2x128xf32>
    %c0_12 = arith.constant 0 : index
    %c3 = arith.constant 3 : index
    %c0_13 = arith.constant 0 : index
    %c0_14 = arith.constant 0 : index
    %15 = vector.load %arg4[%c0_12, %c3, %c0_13, %c0_14] : memref<1x32x2x128xf32, #tpu.memory_space<vmem>>, vector<1x1x2x128xf32>
    %16 = vector.shape_cast %15 : vector<1x1x2x128xf32> to vector<2x128xf32>
    %c3_15 = arith.constant 3 : index
    %17 = memref.load %arg2[%c3_15] : memref<128xf32, #tpu.memory_space<smem>>
    %18 = vector.broadcast %17 : f32 to vector<2x128xf32>
    %19 = arith.mulf %18, %16 : vector<2x128xf32>
    %c0_16 = arith.constant 0 : index
    %c4 = arith.constant 4 : index
    %c0_17 = arith.constant 0 : index
    %c0_18 = arith.constant 0 : index
    %20 = vector.load %arg4[%c0_16, %c4, %c0_17, %c0_18] : memref<1x32x2x128xf32, #tpu.memory_space<vmem>>, vector<1x1x2x128xf32>
    %21 = vector.shape_cast %20 : vector<1x1x2x128xf32> to vector<2x128xf32>
    %c4_19 = arith.constant 4 : index
    %22 = memref.load %arg2[%c4_19] : memref<128xf32, #tpu.memory_space<smem>>
    %23 = vector.broadcast %22 : f32 to vector<2x128xf32>
    %24 = arith.mulf %23, %21 : vector<2x128xf32>
    %25 = arith.addf %4, %24 : vector<2x128xf32>
    %c0_20 = arith.constant 0 : index
    %c5 = arith.constant 5 : index
    %c0_21 = arith.constant 0 : index
    %c0_22 = arith.constant 0 : index
    %26 = vector.load %arg4[%c0_20, %c5, %c0_21, %c0_22] : memref<1x32x2x128xf32, #tpu.memory_space<vmem>>, vector<1x1x2x128xf32>
    %27 = vector.shape_cast %26 : vector<1x1x2x128xf32> to vector<2x128xf32>
    %c5_23 = arith.constant 5 : index
    %28 = memref.load %arg2[%c5_23] : memref<128xf32, #tpu.memory_space<smem>>
    %29 = vector.broadcast %28 : f32 to vector<2x128xf32>
    %30 = arith.mulf %29, %27 : vector<2x128xf32>
    %31 = arith.addf %9, %30 : vector<2x128xf32>
    %c0_24 = arith.constant 0 : index
    %c6 = arith.constant 6 : index
    %c0_25 = arith.constant 0 : index
    %c0_26 = arith.constant 0 : index
    %32 = vector.load %arg4[%c0_24, %c6, %c0_25, %c0_26] : memref<1x32x2x128xf32, #tpu.memory_space<vmem>>, vector<1x1x2x128xf32>
    %33 = vector.shape_cast %32 : vector<1x1x2x128xf32> to vector<2x128xf32>
    %c6_27 = arith.constant 6 : index
    %34 = memref.load %arg2[%c6_27] : memref<128xf32, #tpu.memory_space<smem>>
    %35 = vector.broadcast %34 : f32 to vector<2x128xf32>
    %36 = arith.mulf %35, %33 : vector<2x128xf32>
    %37 = arith.addf %14, %36 : vector<2x128xf32>
    %c0_28 = arith.constant 0 : index
    %c7 = arith.constant 7 : index
    %c0_29 = arith.constant 0 : index
    %c0_30 = arith.constant 0 : index
    %38 = vector.load %arg4[%c0_28, %c7, %c0_29, %c0_30] : memref<1x32x2x128xf32, #tpu.memory_space<vmem>>, vector<1x1x2x128xf32>
    %39 = vector.shape_cast %38 : vector<1x1x2x128xf32> to vector<2x128xf32>
    %c7_31 = arith.constant 7 : index
    %40 = memref.load %arg2[%c7_31] : memref<128xf32, #tpu.memory_space<smem>>
    %41 = vector.broadcast %40 : f32 to vector<2x128xf32>
    %42 = arith.mulf %41, %39 : vector<2x128xf32>
    %43 = arith.addf %19, %42 : vector<2x128xf32>
    %c0_32 = arith.constant 0 : index
    %c8 = arith.constant 8 : index
    %c0_33 = arith.constant 0 : index
    %c0_34 = arith.constant 0 : index
    %44 = vector.load %arg4[%c0_32, %c8, %c0_33, %c0_34] : memref<1x32x2x128xf32, #tpu.memory_space<vmem>>, vector<1x1x2x128xf32>
    %45 = vector.shape_cast %44 : vector<1x1x2x128xf32> to vector<2x128xf32>
    %c8_35 = arith.constant 8 : index
    %46 = memref.load %arg2[%c8_35] : memref<128xf32, #tpu.memory_space<smem>>
    %47 = vector.broadcast %46 : f32 to vector<2x128xf32>
    %48 = arith.mulf %47, %45 : vector<2x128xf32>
    %49 = arith.addf %25, %48 : vector<2x128xf32>
    %c0_36 = arith.constant 0 : index
    %c9 = arith.constant 9 : index
    %c0_37 = arith.constant 0 : index
    %c0_38 = arith.constant 0 : index
    %50 = vector.load %arg4[%c0_36, %c9, %c0_37, %c0_38] : memref<1x32x2x128xf32, #tpu.memory_space<vmem>>, vector<1x1x2x128xf32>
    %51 = vector.shape_cast %50 : vector<1x1x2x128xf32> to vector<2x128xf32>
    %c9_39 = arith.constant 9 : index
    %52 = memref.load %arg2[%c9_39] : memref<128xf32, #tpu.memory_space<smem>>
    %53 = vector.broadcast %52 : f32 to vector<2x128xf32>
    %54 = arith.mulf %53, %51 : vector<2x128xf32>
    %55 = arith.addf %31, %54 : vector<2x128xf32>
    %c0_40 = arith.constant 0 : index
    %c10 = arith.constant 10 : index
    %c0_41 = arith.constant 0 : index
    %c0_42 = arith.constant 0 : index
    %56 = vector.load %arg4[%c0_40, %c10, %c0_41, %c0_42] : memref<1x32x2x128xf32, #tpu.memory_space<vmem>>, vector<1x1x2x128xf32>
    %57 = vector.shape_cast %56 : vector<1x1x2x128xf32> to vector<2x128xf32>
    %c10_43 = arith.constant 10 : index
    %58 = memref.load %arg2[%c10_43] : memref<128xf32, #tpu.memory_space<smem>>
    %59 = vector.broadcast %58 : f32 to vector<2x128xf32>
    %60 = arith.mulf %59, %57 : vector<2x128xf32>
    %61 = arith.addf %37, %60 : vector<2x128xf32>
    %c0_44 = arith.constant 0 : index
    %c11 = arith.constant 11 : index
    %c0_45 = arith.constant 0 : index
    %c0_46 = arith.constant 0 : index
    %62 = vector.load %arg4[%c0_44, %c11, %c0_45, %c0_46] : memref<1x32x2x128xf32, #tpu.memory_space<vmem>>, vector<1x1x2x128xf32>
    %63 = vector.shape_cast %62 : vector<1x1x2x128xf32> to vector<2x128xf32>
    %c11_47 = arith.constant 11 : index
    %64 = memref.load %arg2[%c11_47] : memref<128xf32, #tpu.memory_space<smem>>
    %65 = vector.broadcast %64 : f32 to vector<2x128xf32>
    %66 = arith.mulf %65, %63 : vector<2x128xf32>
    %67 = arith.addf %43, %66 : vector<2x128xf32>
    %c0_48 = arith.constant 0 : index
    %c12 = arith.constant 12 : index
    %c0_49 = arith.constant 0 : index
    %c0_50 = arith.constant 0 : index
    %68 = vector.load %arg4[%c0_48, %c12, %c0_49, %c0_50] : memref<1x32x2x128xf32, #tpu.memory_space<vmem>>, vector<1x1x2x128xf32>
    %69 = vector.shape_cast %68 : vector<1x1x2x128xf32> to vector<2x128xf32>
    %c12_51 = arith.constant 12 : index
    %70 = memref.load %arg2[%c12_51] : memref<128xf32, #tpu.memory_space<smem>>
    %71 = vector.broadcast %70 : f32 to vector<2x128xf32>
    %72 = arith.mulf %71, %69 : vector<2x128xf32>
    %73 = arith.addf %49, %72 : vector<2x128xf32>
    %c0_52 = arith.constant 0 : index
    %c13 = arith.constant 13 : index
    %c0_53 = arith.constant 0 : index
    %c0_54 = arith.constant 0 : index
    %74 = vector.load %arg4[%c0_52, %c13, %c0_53, %c0_54] : memref<1x32x2x128xf32, #tpu.memory_space<vmem>>, vector<1x1x2x128xf32>
    %75 = vector.shape_cast %74 : vector<1x1x2x128xf32> to vector<2x128xf32>
    %c13_55 = arith.constant 13 : index
    %76 = memref.load %arg2[%c13_55] : memref<128xf32, #tpu.memory_space<smem>>
    %77 = vector.broadcast %76 : f32 to vector<2x128xf32>
    %78 = arith.mulf %77, %75 : vector<2x128xf32>
    %79 = arith.addf %55, %78 : vector<2x128xf32>
    %c0_56 = arith.constant 0 : index
    %c14 = arith.constant 14 : index
    %c0_57 = arith.constant 0 : index
    %c0_58 = arith.constant 0 : index
    %80 = vector.load %arg4[%c0_56, %c14, %c0_57, %c0_58] : memref<1x32x2x128xf32, #tpu.memory_space<vmem>>, vector<1x1x2x128xf32>
    %81 = vector.shape_cast %80 : vector<1x1x2x128xf32> to vector<2x128xf32>
    %c14_59 = arith.constant 14 : index
    %82 = memref.load %arg2[%c14_59] : memref<128xf32, #tpu.memory_space<smem>>
    %83 = vector.broadcast %82 : f32 to vector<2x128xf32>
    %84 = arith.mulf %83, %81 : vector<2x128xf32>
    %85 = arith.addf %61, %84 : vector<2x128xf32>
    %c0_60 = arith.constant 0 : index
    %c15 = arith.constant 15 : index
    %c0_61 = arith.constant 0 : index
    %c0_62 = arith.constant 0 : index
    %86 = vector.load %arg4[%c0_60, %c15, %c0_61, %c0_62] : memref<1x32x2x128xf32, #tpu.memory_space<vmem>>, vector<1x1x2x128xf32>
    %87 = vector.shape_cast %86 : vector<1x1x2x128xf32> to vector<2x128xf32>
    %c15_63 = arith.constant 15 : index
    %88 = memref.load %arg2[%c15_63] : memref<128xf32, #tpu.memory_space<smem>>
    %89 = vector.broadcast %88 : f32 to vector<2x128xf32>
    %90 = arith.mulf %89, %87 : vector<2x128xf32>
    %91 = arith.addf %67, %90 : vector<2x128xf32>
    %c0_64 = arith.constant 0 : index
    %c16 = arith.constant 16 : index
    %c0_65 = arith.constant 0 : index
    %c0_66 = arith.constant 0 : index
    %92 = vector.load %arg4[%c0_64, %c16, %c0_65, %c0_66] : memref<1x32x2x128xf32, #tpu.memory_space<vmem>>, vector<1x1x2x128xf32>
    %93 = vector.shape_cast %92 : vector<1x1x2x128xf32> to vector<2x128xf32>
    %c16_67 = arith.constant 16 : index
    %94 = memref.load %arg2[%c16_67] : memref<128xf32, #tpu.memory_space<smem>>
    %95 = vector.broadcast %94 : f32 to vector<2x128xf32>
    %96 = arith.mulf %95, %93 : vector<2x128xf32>
    %97 = arith.addf %73, %96 : vector<2x128xf32>
    %c0_68 = arith.constant 0 : index
    %c17 = arith.constant 17 : index
    %c0_69 = arith.constant 0 : index
    %c0_70 = arith.constant 0 : index
    %98 = vector.load %arg4[%c0_68, %c17, %c0_69, %c0_70] : memref<1x32x2x128xf32, #tpu.memory_space<vmem>>, vector<1x1x2x128xf32>
    %99 = vector.shape_cast %98 : vector<1x1x2x128xf32> to vector<2x128xf32>
    %c17_71 = arith.constant 17 : index
    %100 = memref.load %arg2[%c17_71] : memref<128xf32, #tpu.memory_space<smem>>
    %101 = vector.broadcast %100 : f32 to vector<2x128xf32>
    %102 = arith.mulf %101, %99 : vector<2x128xf32>
    %103 = arith.addf %79, %102 : vector<2x128xf32>
    %c0_72 = arith.constant 0 : index
    %c18 = arith.constant 18 : index
    %c0_73 = arith.constant 0 : index
    %c0_74 = arith.constant 0 : index
    %104 = vector.load %arg4[%c0_72, %c18, %c0_73, %c0_74] : memref<1x32x2x128xf32, #tpu.memory_space<vmem>>, vector<1x1x2x128xf32>
    %105 = vector.shape_cast %104 : vector<1x1x2x128xf32> to vector<2x128xf32>
    %c18_75 = arith.constant 18 : index
    %106 = memref.load %arg2[%c18_75] : memref<128xf32, #tpu.memory_space<smem>>
    %107 = vector.broadcast %106 : f32 to vector<2x128xf32>
    %108 = arith.mulf %107, %105 : vector<2x128xf32>
    %109 = arith.addf %85, %108 : vector<2x128xf32>
    %c0_76 = arith.constant 0 : index
    %c19 = arith.constant 19 : index
    %c0_77 = arith.constant 0 : index
    %c0_78 = arith.constant 0 : index
    %110 = vector.load %arg4[%c0_76, %c19, %c0_77, %c0_78] : memref<1x32x2x128xf32, #tpu.memory_space<vmem>>, vector<1x1x2x128xf32>
    %111 = vector.shape_cast %110 : vector<1x1x2x128xf32> to vector<2x128xf32>
    %c19_79 = arith.constant 19 : index
    %112 = memref.load %arg2[%c19_79] : memref<128xf32, #tpu.memory_space<smem>>
    %113 = vector.broadcast %112 : f32 to vector<2x128xf32>
    %114 = arith.mulf %113, %111 : vector<2x128xf32>
    %115 = arith.addf %91, %114 : vector<2x128xf32>
    %c0_80 = arith.constant 0 : index
    %c20 = arith.constant 20 : index
    %c0_81 = arith.constant 0 : index
    %c0_82 = arith.constant 0 : index
    %116 = vector.load %arg4[%c0_80, %c20, %c0_81, %c0_82] : memref<1x32x2x128xf32, #tpu.memory_space<vmem>>, vector<1x1x2x128xf32>
    %117 = vector.shape_cast %116 : vector<1x1x2x128xf32> to vector<2x128xf32>
    %c20_83 = arith.constant 20 : index
    %118 = memref.load %arg2[%c20_83] : memref<128xf32, #tpu.memory_space<smem>>
    %119 = vector.broadcast %118 : f32 to vector<2x128xf32>
    %120 = arith.mulf %119, %117 : vector<2x128xf32>
    %121 = arith.addf %97, %120 : vector<2x128xf32>
    %c0_84 = arith.constant 0 : index
    %c21 = arith.constant 21 : index
    %c0_85 = arith.constant 0 : index
    %c0_86 = arith.constant 0 : index
    %122 = vector.load %arg4[%c0_84, %c21, %c0_85, %c0_86] : memref<1x32x2x128xf32, #tpu.memory_space<vmem>>, vector<1x1x2x128xf32>
    %123 = vector.shape_cast %122 : vector<1x1x2x128xf32> to vector<2x128xf32>
    %c21_87 = arith.constant 21 : index
    %124 = memref.load %arg2[%c21_87] : memref<128xf32, #tpu.memory_space<smem>>
    %125 = vector.broadcast %124 : f32 to vector<2x128xf32>
    %126 = arith.mulf %125, %123 : vector<2x128xf32>
    %127 = arith.addf %103, %126 : vector<2x128xf32>
    %c0_88 = arith.constant 0 : index
    %c22 = arith.constant 22 : index
    %c0_89 = arith.constant 0 : index
    %c0_90 = arith.constant 0 : index
    %128 = vector.load %arg4[%c0_88, %c22, %c0_89, %c0_90] : memref<1x32x2x128xf32, #tpu.memory_space<vmem>>, vector<1x1x2x128xf32>
    %129 = vector.shape_cast %128 : vector<1x1x2x128xf32> to vector<2x128xf32>
    %c22_91 = arith.constant 22 : index
    %130 = memref.load %arg2[%c22_91] : memref<128xf32, #tpu.memory_space<smem>>
    %131 = vector.broadcast %130 : f32 to vector<2x128xf32>
    %132 = arith.mulf %131, %129 : vector<2x128xf32>
    %133 = arith.addf %109, %132 : vector<2x128xf32>
    %c0_92 = arith.constant 0 : index
    %c23 = arith.constant 23 : index
    %c0_93 = arith.constant 0 : index
    %c0_94 = arith.constant 0 : index
    %134 = vector.load %arg4[%c0_92, %c23, %c0_93, %c0_94] : memref<1x32x2x128xf32, #tpu.memory_space<vmem>>, vector<1x1x2x128xf32>
    %135 = vector.shape_cast %134 : vector<1x1x2x128xf32> to vector<2x128xf32>
    %c23_95 = arith.constant 23 : index
    %136 = memref.load %arg2[%c23_95] : memref<128xf32, #tpu.memory_space<smem>>
    %137 = vector.broadcast %136 : f32 to vector<2x128xf32>
    %138 = arith.mulf %137, %135 : vector<2x128xf32>
    %139 = arith.addf %115, %138 : vector<2x128xf32>
    %c0_96 = arith.constant 0 : index
    %c24 = arith.constant 24 : index
    %c0_97 = arith.constant 0 : index
    %c0_98 = arith.constant 0 : index
    %140 = vector.load %arg4[%c0_96, %c24, %c0_97, %c0_98] : memref<1x32x2x128xf32, #tpu.memory_space<vmem>>, vector<1x1x2x128xf32>
    %141 = vector.shape_cast %140 : vector<1x1x2x128xf32> to vector<2x128xf32>
    %c24_99 = arith.constant 24 : index
    %142 = memref.load %arg2[%c24_99] : memref<128xf32, #tpu.memory_space<smem>>
    %143 = vector.broadcast %142 : f32 to vector<2x128xf32>
    %144 = arith.mulf %143, %141 : vector<2x128xf32>
    %145 = arith.addf %121, %144 : vector<2x128xf32>
    %c0_100 = arith.constant 0 : index
    %c25 = arith.constant 25 : index
    %c0_101 = arith.constant 0 : index
    %c0_102 = arith.constant 0 : index
    %146 = vector.load %arg4[%c0_100, %c25, %c0_101, %c0_102] : memref<1x32x2x128xf32, #tpu.memory_space<vmem>>, vector<1x1x2x128xf32>
    %147 = vector.shape_cast %146 : vector<1x1x2x128xf32> to vector<2x128xf32>
    %c25_103 = arith.constant 25 : index
    %148 = memref.load %arg2[%c25_103] : memref<128xf32, #tpu.memory_space<smem>>
    %149 = vector.broadcast %148 : f32 to vector<2x128xf32>
    %150 = arith.mulf %149, %147 : vector<2x128xf32>
    %151 = arith.addf %127, %150 : vector<2x128xf32>
    %c0_104 = arith.constant 0 : index
    %c26 = arith.constant 26 : index
    %c0_105 = arith.constant 0 : index
    %c0_106 = arith.constant 0 : index
    %152 = vector.load %arg4[%c0_104, %c26, %c0_105, %c0_106] : memref<1x32x2x128xf32, #tpu.memory_space<vmem>>, vector<1x1x2x128xf32>
    %153 = vector.shape_cast %152 : vector<1x1x2x128xf32> to vector<2x128xf32>
    %c26_107 = arith.constant 26 : index
    %154 = memref.load %arg2[%c26_107] : memref<128xf32, #tpu.memory_space<smem>>
    %155 = vector.broadcast %154 : f32 to vector<2x128xf32>
    %156 = arith.mulf %155, %153 : vector<2x128xf32>
    %157 = arith.addf %133, %156 : vector<2x128xf32>
    %c0_108 = arith.constant 0 : index
    %c27 = arith.constant 27 : index
    %c0_109 = arith.constant 0 : index
    %c0_110 = arith.constant 0 : index
    %158 = vector.load %arg4[%c0_108, %c27, %c0_109, %c0_110] : memref<1x32x2x128xf32, #tpu.memory_space<vmem>>, vector<1x1x2x128xf32>
    %159 = vector.shape_cast %158 : vector<1x1x2x128xf32> to vector<2x128xf32>
    %c27_111 = arith.constant 27 : index
    %160 = memref.load %arg2[%c27_111] : memref<128xf32, #tpu.memory_space<smem>>
    %161 = vector.broadcast %160 : f32 to vector<2x128xf32>
    %162 = arith.mulf %161, %159 : vector<2x128xf32>
    %163 = arith.addf %139, %162 : vector<2x128xf32>
    %c0_112 = arith.constant 0 : index
    %c28 = arith.constant 28 : index
    %c0_113 = arith.constant 0 : index
    %c0_114 = arith.constant 0 : index
    %164 = vector.load %arg4[%c0_112, %c28, %c0_113, %c0_114] : memref<1x32x2x128xf32, #tpu.memory_space<vmem>>, vector<1x1x2x128xf32>
    %165 = vector.shape_cast %164 : vector<1x1x2x128xf32> to vector<2x128xf32>
    %c28_115 = arith.constant 28 : index
    %166 = memref.load %arg2[%c28_115] : memref<128xf32, #tpu.memory_space<smem>>
    %167 = vector.broadcast %166 : f32 to vector<2x128xf32>
    %168 = arith.mulf %167, %165 : vector<2x128xf32>
    %169 = arith.addf %145, %168 : vector<2x128xf32>
    %c0_116 = arith.constant 0 : index
    %c29 = arith.constant 29 : index
    %c0_117 = arith.constant 0 : index
    %c0_118 = arith.constant 0 : index
    %170 = vector.load %arg4[%c0_116, %c29, %c0_117, %c0_118] : memref<1x32x2x128xf32, #tpu.memory_space<vmem>>, vector<1x1x2x128xf32>
    %171 = vector.shape_cast %170 : vector<1x1x2x128xf32> to vector<2x128xf32>
    %c29_119 = arith.constant 29 : index
    %172 = memref.load %arg2[%c29_119] : memref<128xf32, #tpu.memory_space<smem>>
    %173 = vector.broadcast %172 : f32 to vector<2x128xf32>
    %174 = arith.mulf %173, %171 : vector<2x128xf32>
    %175 = arith.addf %151, %174 : vector<2x128xf32>
    %c0_120 = arith.constant 0 : index
    %c30 = arith.constant 30 : index
    %c0_121 = arith.constant 0 : index
    %c0_122 = arith.constant 0 : index
    %176 = vector.load %arg4[%c0_120, %c30, %c0_121, %c0_122] : memref<1x32x2x128xf32, #tpu.memory_space<vmem>>, vector<1x1x2x128xf32>
    %177 = vector.shape_cast %176 : vector<1x1x2x128xf32> to vector<2x128xf32>
    %c30_123 = arith.constant 30 : index
    %178 = memref.load %arg2[%c30_123] : memref<128xf32, #tpu.memory_space<smem>>
    %179 = vector.broadcast %178 : f32 to vector<2x128xf32>
    %180 = arith.mulf %179, %177 : vector<2x128xf32>
    %181 = arith.addf %157, %180 : vector<2x128xf32>
    %c0_124 = arith.constant 0 : index
    %c31 = arith.constant 31 : index
    %c0_125 = arith.constant 0 : index
    %c0_126 = arith.constant 0 : index
    %182 = vector.load %arg4[%c0_124, %c31, %c0_125, %c0_126] : memref<1x32x2x128xf32, #tpu.memory_space<vmem>>, vector<1x1x2x128xf32>
    %183 = vector.shape_cast %182 : vector<1x1x2x128xf32> to vector<2x128xf32>
    %c31_127 = arith.constant 31 : index
    %184 = memref.load %arg2[%c31_127] : memref<128xf32, #tpu.memory_space<smem>>
    %185 = vector.broadcast %184 : f32 to vector<2x128xf32>
    %186 = arith.mulf %185, %183 : vector<2x128xf32>
    %187 = arith.addf %163, %186 : vector<2x128xf32>
    %c0_128 = arith.constant 0 : index
    %c0_129 = arith.constant 0 : index
    %c0_130 = arith.constant 0 : index
    %c0_131 = arith.constant 0 : index
    %188 = vector.load %arg5[%c0_128, %c0_129, %c0_130, %c0_131] : memref<1x32x2x128xf32, #tpu.memory_space<vmem>>, vector<1x1x2x128xf32>
    %189 = vector.shape_cast %188 : vector<1x1x2x128xf32> to vector<2x128xf32>
    %c32 = arith.constant 32 : index
    %190 = memref.load %arg2[%c32] : memref<128xf32, #tpu.memory_space<smem>>
    %191 = vector.broadcast %190 : f32 to vector<2x128xf32>
    %192 = arith.mulf %191, %189 : vector<2x128xf32>
    %193 = arith.addf %169, %192 : vector<2x128xf32>
    %c0_132 = arith.constant 0 : index
    %c1_133 = arith.constant 1 : index
    %c0_134 = arith.constant 0 : index
    %c0_135 = arith.constant 0 : index
    %194 = vector.load %arg5[%c0_132, %c1_133, %c0_134, %c0_135] : memref<1x32x2x128xf32, #tpu.memory_space<vmem>>, vector<1x1x2x128xf32>
    %195 = vector.shape_cast %194 : vector<1x1x2x128xf32> to vector<2x128xf32>
    %c33 = arith.constant 33 : index
    %196 = memref.load %arg2[%c33] : memref<128xf32, #tpu.memory_space<smem>>
    %197 = vector.broadcast %196 : f32 to vector<2x128xf32>
    %198 = arith.mulf %197, %195 : vector<2x128xf32>
    %199 = arith.addf %175, %198 : vector<2x128xf32>
    %c0_136 = arith.constant 0 : index
    %c2_137 = arith.constant 2 : index
    %c0_138 = arith.constant 0 : index
    %c0_139 = arith.constant 0 : index
    %200 = vector.load %arg5[%c0_136, %c2_137, %c0_138, %c0_139] : memref<1x32x2x128xf32, #tpu.memory_space<vmem>>, vector<1x1x2x128xf32>
    %201 = vector.shape_cast %200 : vector<1x1x2x128xf32> to vector<2x128xf32>
    %c34 = arith.constant 34 : index
    %202 = memref.load %arg2[%c34] : memref<128xf32, #tpu.memory_space<smem>>
    %203 = vector.broadcast %202 : f32 to vector<2x128xf32>
    %204 = arith.mulf %203, %201 : vector<2x128xf32>
    %205 = arith.addf %181, %204 : vector<2x128xf32>
    %c0_140 = arith.constant 0 : index
    %c3_141 = arith.constant 3 : index
    %c0_142 = arith.constant 0 : index
    %c0_143 = arith.constant 0 : index
    %206 = vector.load %arg5[%c0_140, %c3_141, %c0_142, %c0_143] : memref<1x32x2x128xf32, #tpu.memory_space<vmem>>, vector<1x1x2x128xf32>
    %207 = vector.shape_cast %206 : vector<1x1x2x128xf32> to vector<2x128xf32>
    %c35 = arith.constant 35 : index
    %208 = memref.load %arg2[%c35] : memref<128xf32, #tpu.memory_space<smem>>
    %209 = vector.broadcast %208 : f32 to vector<2x128xf32>
    %210 = arith.mulf %209, %207 : vector<2x128xf32>
    %211 = arith.addf %187, %210 : vector<2x128xf32>
    %c0_144 = arith.constant 0 : index
    %c4_145 = arith.constant 4 : index
    %c0_146 = arith.constant 0 : index
    %c0_147 = arith.constant 0 : index
    %212 = vector.load %arg5[%c0_144, %c4_145, %c0_146, %c0_147] : memref<1x32x2x128xf32, #tpu.memory_space<vmem>>, vector<1x1x2x128xf32>
    %213 = vector.shape_cast %212 : vector<1x1x2x128xf32> to vector<2x128xf32>
    %c36 = arith.constant 36 : index
    %214 = memref.load %arg2[%c36] : memref<128xf32, #tpu.memory_space<smem>>
    %215 = vector.broadcast %214 : f32 to vector<2x128xf32>
    %216 = arith.mulf %215, %213 : vector<2x128xf32>
    %217 = arith.addf %193, %216 : vector<2x128xf32>
    %c0_148 = arith.constant 0 : index
    %c5_149 = arith.constant 5 : index
    %c0_150 = arith.constant 0 : index
    %c0_151 = arith.constant 0 : index
    %218 = vector.load %arg5[%c0_148, %c5_149, %c0_150, %c0_151] : memref<1x32x2x128xf32, #tpu.memory_space<vmem>>, vector<1x1x2x128xf32>
    %219 = vector.shape_cast %218 : vector<1x1x2x128xf32> to vector<2x128xf32>
    %c37 = arith.constant 37 : index
    %220 = memref.load %arg2[%c37] : memref<128xf32, #tpu.memory_space<smem>>
    %221 = vector.broadcast %220 : f32 to vector<2x128xf32>
    %222 = arith.mulf %221, %219 : vector<2x128xf32>
    %223 = arith.addf %199, %222 : vector<2x128xf32>
    %c0_152 = arith.constant 0 : index
    %c6_153 = arith.constant 6 : index
    %c0_154 = arith.constant 0 : index
    %c0_155 = arith.constant 0 : index
    %224 = vector.load %arg5[%c0_152, %c6_153, %c0_154, %c0_155] : memref<1x32x2x128xf32, #tpu.memory_space<vmem>>, vector<1x1x2x128xf32>
    %225 = vector.shape_cast %224 : vector<1x1x2x128xf32> to vector<2x128xf32>
    %c38 = arith.constant 38 : index
    %226 = memref.load %arg2[%c38] : memref<128xf32, #tpu.memory_space<smem>>
    %227 = vector.broadcast %226 : f32 to vector<2x128xf32>
    %228 = arith.mulf %227, %225 : vector<2x128xf32>
    %229 = arith.addf %205, %228 : vector<2x128xf32>
    %c0_156 = arith.constant 0 : index
    %c7_157 = arith.constant 7 : index
    %c0_158 = arith.constant 0 : index
    %c0_159 = arith.constant 0 : index
    %230 = vector.load %arg5[%c0_156, %c7_157, %c0_158, %c0_159] : memref<1x32x2x128xf32, #tpu.memory_space<vmem>>, vector<1x1x2x128xf32>
    %231 = vector.shape_cast %230 : vector<1x1x2x128xf32> to vector<2x128xf32>
    %c39 = arith.constant 39 : index
    %232 = memref.load %arg2[%c39] : memref<128xf32, #tpu.memory_space<smem>>
    %233 = vector.broadcast %232 : f32 to vector<2x128xf32>
    %234 = arith.mulf %233, %231 : vector<2x128xf32>
    %235 = arith.addf %211, %234 : vector<2x128xf32>
    %c0_160 = arith.constant 0 : index
    %c8_161 = arith.constant 8 : index
    %c0_162 = arith.constant 0 : index
    %c0_163 = arith.constant 0 : index
    %236 = vector.load %arg5[%c0_160, %c8_161, %c0_162, %c0_163] : memref<1x32x2x128xf32, #tpu.memory_space<vmem>>, vector<1x1x2x128xf32>
    %237 = vector.shape_cast %236 : vector<1x1x2x128xf32> to vector<2x128xf32>
    %c40 = arith.constant 40 : index
    %238 = memref.load %arg2[%c40] : memref<128xf32, #tpu.memory_space<smem>>
    %239 = vector.broadcast %238 : f32 to vector<2x128xf32>
    %240 = arith.mulf %239, %237 : vector<2x128xf32>
    %241 = arith.addf %217, %240 : vector<2x128xf32>
    %c0_164 = arith.constant 0 : index
    %c9_165 = arith.constant 9 : index
    %c0_166 = arith.constant 0 : index
    %c0_167 = arith.constant 0 : index
    %242 = vector.load %arg5[%c0_164, %c9_165, %c0_166, %c0_167] : memref<1x32x2x128xf32, #tpu.memory_space<vmem>>, vector<1x1x2x128xf32>
    %243 = vector.shape_cast %242 : vector<1x1x2x128xf32> to vector<2x128xf32>
    %c41 = arith.constant 41 : index
    %244 = memref.load %arg2[%c41] : memref<128xf32, #tpu.memory_space<smem>>
    %245 = vector.broadcast %244 : f32 to vector<2x128xf32>
    %246 = arith.mulf %245, %243 : vector<2x128xf32>
    %247 = arith.addf %223, %246 : vector<2x128xf32>
    %c0_168 = arith.constant 0 : index
    %c10_169 = arith.constant 10 : index
    %c0_170 = arith.constant 0 : index
    %c0_171 = arith.constant 0 : index
    %248 = vector.load %arg5[%c0_168, %c10_169, %c0_170, %c0_171] : memref<1x32x2x128xf32, #tpu.memory_space<vmem>>, vector<1x1x2x128xf32>
    %249 = vector.shape_cast %248 : vector<1x1x2x128xf32> to vector<2x128xf32>
    %c42 = arith.constant 42 : index
    %250 = memref.load %arg2[%c42] : memref<128xf32, #tpu.memory_space<smem>>
    %251 = vector.broadcast %250 : f32 to vector<2x128xf32>
    %252 = arith.mulf %251, %249 : vector<2x128xf32>
    %253 = arith.addf %229, %252 : vector<2x128xf32>
    %c0_172 = arith.constant 0 : index
    %c11_173 = arith.constant 11 : index
    %c0_174 = arith.constant 0 : index
    %c0_175 = arith.constant 0 : index
    %254 = vector.load %arg5[%c0_172, %c11_173, %c0_174, %c0_175] : memref<1x32x2x128xf32, #tpu.memory_space<vmem>>, vector<1x1x2x128xf32>
    %255 = vector.shape_cast %254 : vector<1x1x2x128xf32> to vector<2x128xf32>
    %c43 = arith.constant 43 : index
    %256 = memref.load %arg2[%c43] : memref<128xf32, #tpu.memory_space<smem>>
    %257 = vector.broadcast %256 : f32 to vector<2x128xf32>
    %258 = arith.mulf %257, %255 : vector<2x128xf32>
    %259 = arith.addf %235, %258 : vector<2x128xf32>
    %c0_176 = arith.constant 0 : index
    %c12_177 = arith.constant 12 : index
    %c0_178 = arith.constant 0 : index
    %c0_179 = arith.constant 0 : index
    %260 = vector.load %arg5[%c0_176, %c12_177, %c0_178, %c0_179] : memref<1x32x2x128xf32, #tpu.memory_space<vmem>>, vector<1x1x2x128xf32>
    %261 = vector.shape_cast %260 : vector<1x1x2x128xf32> to vector<2x128xf32>
    %c44 = arith.constant 44 : index
    %262 = memref.load %arg2[%c44] : memref<128xf32, #tpu.memory_space<smem>>
    %263 = vector.broadcast %262 : f32 to vector<2x128xf32>
    %264 = arith.mulf %263, %261 : vector<2x128xf32>
    %265 = arith.addf %241, %264 : vector<2x128xf32>
    %c0_180 = arith.constant 0 : index
    %c13_181 = arith.constant 13 : index
    %c0_182 = arith.constant 0 : index
    %c0_183 = arith.constant 0 : index
    %266 = vector.load %arg5[%c0_180, %c13_181, %c0_182, %c0_183] : memref<1x32x2x128xf32, #tpu.memory_space<vmem>>, vector<1x1x2x128xf32>
    %267 = vector.shape_cast %266 : vector<1x1x2x128xf32> to vector<2x128xf32>
    %c45 = arith.constant 45 : index
    %268 = memref.load %arg2[%c45] : memref<128xf32, #tpu.memory_space<smem>>
    %269 = vector.broadcast %268 : f32 to vector<2x128xf32>
    %270 = arith.mulf %269, %267 : vector<2x128xf32>
    %271 = arith.addf %247, %270 : vector<2x128xf32>
    %c0_184 = arith.constant 0 : index
    %c14_185 = arith.constant 14 : index
    %c0_186 = arith.constant 0 : index
    %c0_187 = arith.constant 0 : index
    %272 = vector.load %arg5[%c0_184, %c14_185, %c0_186, %c0_187] : memref<1x32x2x128xf32, #tpu.memory_space<vmem>>, vector<1x1x2x128xf32>
    %273 = vector.shape_cast %272 : vector<1x1x2x128xf32> to vector<2x128xf32>
    %c46 = arith.constant 46 : index
    %274 = memref.load %arg2[%c46] : memref<128xf32, #tpu.memory_space<smem>>
    %275 = vector.broadcast %274 : f32 to vector<2x128xf32>
    %276 = arith.mulf %275, %273 : vector<2x128xf32>
    %277 = arith.addf %253, %276 : vector<2x128xf32>
    %c0_188 = arith.constant 0 : index
    %c15_189 = arith.constant 15 : index
    %c0_190 = arith.constant 0 : index
    %c0_191 = arith.constant 0 : index
    %278 = vector.load %arg5[%c0_188, %c15_189, %c0_190, %c0_191] : memref<1x32x2x128xf32, #tpu.memory_space<vmem>>, vector<1x1x2x128xf32>
    %279 = vector.shape_cast %278 : vector<1x1x2x128xf32> to vector<2x128xf32>
    %c47 = arith.constant 47 : index
    %280 = memref.load %arg2[%c47] : memref<128xf32, #tpu.memory_space<smem>>
    %281 = vector.broadcast %280 : f32 to vector<2x128xf32>
    %282 = arith.mulf %281, %279 : vector<2x128xf32>
    %283 = arith.addf %259, %282 : vector<2x128xf32>
    %c0_192 = arith.constant 0 : index
    %c16_193 = arith.constant 16 : index
    %c0_194 = arith.constant 0 : index
    %c0_195 = arith.constant 0 : index
    %284 = vector.load %arg5[%c0_192, %c16_193, %c0_194, %c0_195] : memref<1x32x2x128xf32, #tpu.memory_space<vmem>>, vector<1x1x2x128xf32>
    %285 = vector.shape_cast %284 : vector<1x1x2x128xf32> to vector<2x128xf32>
    %c48 = arith.constant 48 : index
    %286 = memref.load %arg2[%c48] : memref<128xf32, #tpu.memory_space<smem>>
    %287 = vector.broadcast %286 : f32 to vector<2x128xf32>
    %288 = arith.mulf %287, %285 : vector<2x128xf32>
    %289 = arith.addf %265, %288 : vector<2x128xf32>
    %c0_196 = arith.constant 0 : index
    %c17_197 = arith.constant 17 : index
    %c0_198 = arith.constant 0 : index
    %c0_199 = arith.constant 0 : index
    %290 = vector.load %arg5[%c0_196, %c17_197, %c0_198, %c0_199] : memref<1x32x2x128xf32, #tpu.memory_space<vmem>>, vector<1x1x2x128xf32>
    %291 = vector.shape_cast %290 : vector<1x1x2x128xf32> to vector<2x128xf32>
    %c49 = arith.constant 49 : index
    %292 = memref.load %arg2[%c49] : memref<128xf32, #tpu.memory_space<smem>>
    %293 = vector.broadcast %292 : f32 to vector<2x128xf32>
    %294 = arith.mulf %293, %291 : vector<2x128xf32>
    %295 = arith.addf %271, %294 : vector<2x128xf32>
    %c0_200 = arith.constant 0 : index
    %c18_201 = arith.constant 18 : index
    %c0_202 = arith.constant 0 : index
    %c0_203 = arith.constant 0 : index
    %296 = vector.load %arg5[%c0_200, %c18_201, %c0_202, %c0_203] : memref<1x32x2x128xf32, #tpu.memory_space<vmem>>, vector<1x1x2x128xf32>
    %297 = vector.shape_cast %296 : vector<1x1x2x128xf32> to vector<2x128xf32>
    %c50 = arith.constant 50 : index
    %298 = memref.load %arg2[%c50] : memref<128xf32, #tpu.memory_space<smem>>
    %299 = vector.broadcast %298 : f32 to vector<2x128xf32>
    %300 = arith.mulf %299, %297 : vector<2x128xf32>
    %301 = arith.addf %277, %300 : vector<2x128xf32>
    %c0_204 = arith.constant 0 : index
    %c19_205 = arith.constant 19 : index
    %c0_206 = arith.constant 0 : index
    %c0_207 = arith.constant 0 : index
    %302 = vector.load %arg5[%c0_204, %c19_205, %c0_206, %c0_207] : memref<1x32x2x128xf32, #tpu.memory_space<vmem>>, vector<1x1x2x128xf32>
    %303 = vector.shape_cast %302 : vector<1x1x2x128xf32> to vector<2x128xf32>
    %c51 = arith.constant 51 : index
    %304 = memref.load %arg2[%c51] : memref<128xf32, #tpu.memory_space<smem>>
    %305 = vector.broadcast %304 : f32 to vector<2x128xf32>
    %306 = arith.mulf %305, %303 : vector<2x128xf32>
    %307 = arith.addf %283, %306 : vector<2x128xf32>
    %c0_208 = arith.constant 0 : index
    %c20_209 = arith.constant 20 : index
    %c0_210 = arith.constant 0 : index
    %c0_211 = arith.constant 0 : index
    %308 = vector.load %arg5[%c0_208, %c20_209, %c0_210, %c0_211] : memref<1x32x2x128xf32, #tpu.memory_space<vmem>>, vector<1x1x2x128xf32>
    %309 = vector.shape_cast %308 : vector<1x1x2x128xf32> to vector<2x128xf32>
    %c52 = arith.constant 52 : index
    %310 = memref.load %arg2[%c52] : memref<128xf32, #tpu.memory_space<smem>>
    %311 = vector.broadcast %310 : f32 to vector<2x128xf32>
    %312 = arith.mulf %311, %309 : vector<2x128xf32>
    %313 = arith.addf %289, %312 : vector<2x128xf32>
    %c0_212 = arith.constant 0 : index
    %c21_213 = arith.constant 21 : index
    %c0_214 = arith.constant 0 : index
    %c0_215 = arith.constant 0 : index
    %314 = vector.load %arg5[%c0_212, %c21_213, %c0_214, %c0_215] : memref<1x32x2x128xf32, #tpu.memory_space<vmem>>, vector<1x1x2x128xf32>
    %315 = vector.shape_cast %314 : vector<1x1x2x128xf32> to vector<2x128xf32>
    %c53 = arith.constant 53 : index
    %316 = memref.load %arg2[%c53] : memref<128xf32, #tpu.memory_space<smem>>
    %317 = vector.broadcast %316 : f32 to vector<2x128xf32>
    %318 = arith.mulf %317, %315 : vector<2x128xf32>
    %319 = arith.addf %295, %318 : vector<2x128xf32>
    %c0_216 = arith.constant 0 : index
    %c22_217 = arith.constant 22 : index
    %c0_218 = arith.constant 0 : index
    %c0_219 = arith.constant 0 : index
    %320 = vector.load %arg5[%c0_216, %c22_217, %c0_218, %c0_219] : memref<1x32x2x128xf32, #tpu.memory_space<vmem>>, vector<1x1x2x128xf32>
    %321 = vector.shape_cast %320 : vector<1x1x2x128xf32> to vector<2x128xf32>
    %c54 = arith.constant 54 : index
    %322 = memref.load %arg2[%c54] : memref<128xf32, #tpu.memory_space<smem>>
    %323 = vector.broadcast %322 : f32 to vector<2x128xf32>
    %324 = arith.mulf %323, %321 : vector<2x128xf32>
    %325 = arith.addf %301, %324 : vector<2x128xf32>
    %c0_220 = arith.constant 0 : index
    %c23_221 = arith.constant 23 : index
    %c0_222 = arith.constant 0 : index
    %c0_223 = arith.constant 0 : index
    %326 = vector.load %arg5[%c0_220, %c23_221, %c0_222, %c0_223] : memref<1x32x2x128xf32, #tpu.memory_space<vmem>>, vector<1x1x2x128xf32>
    %327 = vector.shape_cast %326 : vector<1x1x2x128xf32> to vector<2x128xf32>
    %c55 = arith.constant 55 : index
    %328 = memref.load %arg2[%c55] : memref<128xf32, #tpu.memory_space<smem>>
    %329 = vector.broadcast %328 : f32 to vector<2x128xf32>
    %330 = arith.mulf %329, %327 : vector<2x128xf32>
    %331 = arith.addf %307, %330 : vector<2x128xf32>
    %c0_224 = arith.constant 0 : index
    %c24_225 = arith.constant 24 : index
    %c0_226 = arith.constant 0 : index
    %c0_227 = arith.constant 0 : index
    %332 = vector.load %arg5[%c0_224, %c24_225, %c0_226, %c0_227] : memref<1x32x2x128xf32, #tpu.memory_space<vmem>>, vector<1x1x2x128xf32>
    %333 = vector.shape_cast %332 : vector<1x1x2x128xf32> to vector<2x128xf32>
    %c56 = arith.constant 56 : index
    %334 = memref.load %arg2[%c56] : memref<128xf32, #tpu.memory_space<smem>>
    %335 = vector.broadcast %334 : f32 to vector<2x128xf32>
    %336 = arith.mulf %335, %333 : vector<2x128xf32>
    %337 = arith.addf %313, %336 : vector<2x128xf32>
    %c0_228 = arith.constant 0 : index
    %c25_229 = arith.constant 25 : index
    %c0_230 = arith.constant 0 : index
    %c0_231 = arith.constant 0 : index
    %338 = vector.load %arg5[%c0_228, %c25_229, %c0_230, %c0_231] : memref<1x32x2x128xf32, #tpu.memory_space<vmem>>, vector<1x1x2x128xf32>
    %339 = vector.shape_cast %338 : vector<1x1x2x128xf32> to vector<2x128xf32>
    %c57 = arith.constant 57 : index
    %340 = memref.load %arg2[%c57] : memref<128xf32, #tpu.memory_space<smem>>
    %341 = vector.broadcast %340 : f32 to vector<2x128xf32>
    %342 = arith.mulf %341, %339 : vector<2x128xf32>
    %343 = arith.addf %319, %342 : vector<2x128xf32>
    %c0_232 = arith.constant 0 : index
    %c26_233 = arith.constant 26 : index
    %c0_234 = arith.constant 0 : index
    %c0_235 = arith.constant 0 : index
    %344 = vector.load %arg5[%c0_232, %c26_233, %c0_234, %c0_235] : memref<1x32x2x128xf32, #tpu.memory_space<vmem>>, vector<1x1x2x128xf32>
    %345 = vector.shape_cast %344 : vector<1x1x2x128xf32> to vector<2x128xf32>
    %c58 = arith.constant 58 : index
    %346 = memref.load %arg2[%c58] : memref<128xf32, #tpu.memory_space<smem>>
    %347 = vector.broadcast %346 : f32 to vector<2x128xf32>
    %348 = arith.mulf %347, %345 : vector<2x128xf32>
    %349 = arith.addf %325, %348 : vector<2x128xf32>
    %c0_236 = arith.constant 0 : index
    %c27_237 = arith.constant 27 : index
    %c0_238 = arith.constant 0 : index
    %c0_239 = arith.constant 0 : index
    %350 = vector.load %arg5[%c0_236, %c27_237, %c0_238, %c0_239] : memref<1x32x2x128xf32, #tpu.memory_space<vmem>>, vector<1x1x2x128xf32>
    %351 = vector.shape_cast %350 : vector<1x1x2x128xf32> to vector<2x128xf32>
    %c59 = arith.constant 59 : index
    %352 = memref.load %arg2[%c59] : memref<128xf32, #tpu.memory_space<smem>>
    %353 = vector.broadcast %352 : f32 to vector<2x128xf32>
    %354 = arith.mulf %353, %351 : vector<2x128xf32>
    %355 = arith.addf %331, %354 : vector<2x128xf32>
    %c0_240 = arith.constant 0 : index
    %c28_241 = arith.constant 28 : index
    %c0_242 = arith.constant 0 : index
    %c0_243 = arith.constant 0 : index
    %356 = vector.load %arg5[%c0_240, %c28_241, %c0_242, %c0_243] : memref<1x32x2x128xf32, #tpu.memory_space<vmem>>, vector<1x1x2x128xf32>
    %357 = vector.shape_cast %356 : vector<1x1x2x128xf32> to vector<2x128xf32>
    %c60 = arith.constant 60 : index
    %358 = memref.load %arg2[%c60] : memref<128xf32, #tpu.memory_space<smem>>
    %359 = vector.broadcast %358 : f32 to vector<2x128xf32>
    %360 = arith.mulf %359, %357 : vector<2x128xf32>
    %361 = arith.addf %337, %360 : vector<2x128xf32>
    %c0_244 = arith.constant 0 : index
    %c29_245 = arith.constant 29 : index
    %c0_246 = arith.constant 0 : index
    %c0_247 = arith.constant 0 : index
    %362 = vector.load %arg5[%c0_244, %c29_245, %c0_246, %c0_247] : memref<1x32x2x128xf32, #tpu.memory_space<vmem>>, vector<1x1x2x128xf32>
    %363 = vector.shape_cast %362 : vector<1x1x2x128xf32> to vector<2x128xf32>
    %c61 = arith.constant 61 : index
    %364 = memref.load %arg2[%c61] : memref<128xf32, #tpu.memory_space<smem>>
    %365 = vector.broadcast %364 : f32 to vector<2x128xf32>
    %366 = arith.mulf %365, %363 : vector<2x128xf32>
    %367 = arith.addf %343, %366 : vector<2x128xf32>
    %c0_248 = arith.constant 0 : index
    %c30_249 = arith.constant 30 : index
    %c0_250 = arith.constant 0 : index
    %c0_251 = arith.constant 0 : index
    %368 = vector.load %arg5[%c0_248, %c30_249, %c0_250, %c0_251] : memref<1x32x2x128xf32, #tpu.memory_space<vmem>>, vector<1x1x2x128xf32>
    %369 = vector.shape_cast %368 : vector<1x1x2x128xf32> to vector<2x128xf32>
    %c62 = arith.constant 62 : index
    %370 = memref.load %arg2[%c62] : memref<128xf32, #tpu.memory_space<smem>>
    %371 = vector.broadcast %370 : f32 to vector<2x128xf32>
    %372 = arith.mulf %371, %369 : vector<2x128xf32>
    %373 = arith.addf %349, %372 : vector<2x128xf32>
    %c0_252 = arith.constant 0 : index
    %c31_253 = arith.constant 31 : index
    %c0_254 = arith.constant 0 : index
    %c0_255 = arith.constant 0 : index
    %374 = vector.load %arg5[%c0_252, %c31_253, %c0_254, %c0_255] : memref<1x32x2x128xf32, #tpu.memory_space<vmem>>, vector<1x1x2x128xf32>
    %375 = vector.shape_cast %374 : vector<1x1x2x128xf32> to vector<2x128xf32>
    %c63 = arith.constant 63 : index
    %376 = memref.load %arg2[%c63] : memref<128xf32, #tpu.memory_space<smem>>
    %377 = vector.broadcast %376 : f32 to vector<2x128xf32>
    %378 = arith.mulf %377, %375 : vector<2x128xf32>
    %379 = arith.addf %355, %378 : vector<2x128xf32>
    %c0_256 = arith.constant 0 : index
    %c0_257 = arith.constant 0 : index
    %c0_258 = arith.constant 0 : index
    %c0_259 = arith.constant 0 : index
    %380 = vector.load %arg6[%c0_256, %c0_257, %c0_258, %c0_259] : memref<1x32x2x128xf32, #tpu.memory_space<vmem>>, vector<1x1x2x128xf32>
    %381 = vector.shape_cast %380 : vector<1x1x2x128xf32> to vector<2x128xf32>
    %c64 = arith.constant 64 : index
    %382 = memref.load %arg2[%c64] : memref<128xf32, #tpu.memory_space<smem>>
    %383 = vector.broadcast %382 : f32 to vector<2x128xf32>
    %384 = arith.mulf %383, %381 : vector<2x128xf32>
    %385 = arith.addf %361, %384 : vector<2x128xf32>
    %c0_260 = arith.constant 0 : index
    %c1_261 = arith.constant 1 : index
    %c0_262 = arith.constant 0 : index
    %c0_263 = arith.constant 0 : index
    %386 = vector.load %arg6[%c0_260, %c1_261, %c0_262, %c0_263] : memref<1x32x2x128xf32, #tpu.memory_space<vmem>>, vector<1x1x2x128xf32>
    %387 = vector.shape_cast %386 : vector<1x1x2x128xf32> to vector<2x128xf32>
    %c65 = arith.constant 65 : index
    %388 = memref.load %arg2[%c65] : memref<128xf32, #tpu.memory_space<smem>>
    %389 = vector.broadcast %388 : f32 to vector<2x128xf32>
    %390 = arith.mulf %389, %387 : vector<2x128xf32>
    %391 = arith.addf %367, %390 : vector<2x128xf32>
    %c0_264 = arith.constant 0 : index
    %c2_265 = arith.constant 2 : index
    %c0_266 = arith.constant 0 : index
    %c0_267 = arith.constant 0 : index
    %392 = vector.load %arg6[%c0_264, %c2_265, %c0_266, %c0_267] : memref<1x32x2x128xf32, #tpu.memory_space<vmem>>, vector<1x1x2x128xf32>
    %393 = vector.shape_cast %392 : vector<1x1x2x128xf32> to vector<2x128xf32>
    %c66 = arith.constant 66 : index
    %394 = memref.load %arg2[%c66] : memref<128xf32, #tpu.memory_space<smem>>
    %395 = vector.broadcast %394 : f32 to vector<2x128xf32>
    %396 = arith.mulf %395, %393 : vector<2x128xf32>
    %397 = arith.addf %373, %396 : vector<2x128xf32>
    %c0_268 = arith.constant 0 : index
    %c3_269 = arith.constant 3 : index
    %c0_270 = arith.constant 0 : index
    %c0_271 = arith.constant 0 : index
    %398 = vector.load %arg6[%c0_268, %c3_269, %c0_270, %c0_271] : memref<1x32x2x128xf32, #tpu.memory_space<vmem>>, vector<1x1x2x128xf32>
    %399 = vector.shape_cast %398 : vector<1x1x2x128xf32> to vector<2x128xf32>
    %c67 = arith.constant 67 : index
    %400 = memref.load %arg2[%c67] : memref<128xf32, #tpu.memory_space<smem>>
    %401 = vector.broadcast %400 : f32 to vector<2x128xf32>
    %402 = arith.mulf %401, %399 : vector<2x128xf32>
    %403 = arith.addf %379, %402 : vector<2x128xf32>
    %c0_272 = arith.constant 0 : index
    %c4_273 = arith.constant 4 : index
    %c0_274 = arith.constant 0 : index
    %c0_275 = arith.constant 0 : index
    %404 = vector.load %arg6[%c0_272, %c4_273, %c0_274, %c0_275] : memref<1x32x2x128xf32, #tpu.memory_space<vmem>>, vector<1x1x2x128xf32>
    %405 = vector.shape_cast %404 : vector<1x1x2x128xf32> to vector<2x128xf32>
    %c68 = arith.constant 68 : index
    %406 = memref.load %arg2[%c68] : memref<128xf32, #tpu.memory_space<smem>>
    %407 = vector.broadcast %406 : f32 to vector<2x128xf32>
    %408 = arith.mulf %407, %405 : vector<2x128xf32>
    %409 = arith.addf %385, %408 : vector<2x128xf32>
    %c0_276 = arith.constant 0 : index
    %c5_277 = arith.constant 5 : index
    %c0_278 = arith.constant 0 : index
    %c0_279 = arith.constant 0 : index
    %410 = vector.load %arg6[%c0_276, %c5_277, %c0_278, %c0_279] : memref<1x32x2x128xf32, #tpu.memory_space<vmem>>, vector<1x1x2x128xf32>
    %411 = vector.shape_cast %410 : vector<1x1x2x128xf32> to vector<2x128xf32>
    %c69 = arith.constant 69 : index
    %412 = memref.load %arg2[%c69] : memref<128xf32, #tpu.memory_space<smem>>
    %413 = vector.broadcast %412 : f32 to vector<2x128xf32>
    %414 = arith.mulf %413, %411 : vector<2x128xf32>
    %415 = arith.addf %391, %414 : vector<2x128xf32>
    %c0_280 = arith.constant 0 : index
    %c6_281 = arith.constant 6 : index
    %c0_282 = arith.constant 0 : index
    %c0_283 = arith.constant 0 : index
    %416 = vector.load %arg6[%c0_280, %c6_281, %c0_282, %c0_283] : memref<1x32x2x128xf32, #tpu.memory_space<vmem>>, vector<1x1x2x128xf32>
    %417 = vector.shape_cast %416 : vector<1x1x2x128xf32> to vector<2x128xf32>
    %c70 = arith.constant 70 : index
    %418 = memref.load %arg2[%c70] : memref<128xf32, #tpu.memory_space<smem>>
    %419 = vector.broadcast %418 : f32 to vector<2x128xf32>
    %420 = arith.mulf %419, %417 : vector<2x128xf32>
    %421 = arith.addf %397, %420 : vector<2x128xf32>
    %c0_284 = arith.constant 0 : index
    %c7_285 = arith.constant 7 : index
    %c0_286 = arith.constant 0 : index
    %c0_287 = arith.constant 0 : index
    %422 = vector.load %arg6[%c0_284, %c7_285, %c0_286, %c0_287] : memref<1x32x2x128xf32, #tpu.memory_space<vmem>>, vector<1x1x2x128xf32>
    %423 = vector.shape_cast %422 : vector<1x1x2x128xf32> to vector<2x128xf32>
    %c71 = arith.constant 71 : index
    %424 = memref.load %arg2[%c71] : memref<128xf32, #tpu.memory_space<smem>>
    %425 = vector.broadcast %424 : f32 to vector<2x128xf32>
    %426 = arith.mulf %425, %423 : vector<2x128xf32>
    %427 = arith.addf %403, %426 : vector<2x128xf32>
    %c0_288 = arith.constant 0 : index
    %c8_289 = arith.constant 8 : index
    %c0_290 = arith.constant 0 : index
    %c0_291 = arith.constant 0 : index
    %428 = vector.load %arg6[%c0_288, %c8_289, %c0_290, %c0_291] : memref<1x32x2x128xf32, #tpu.memory_space<vmem>>, vector<1x1x2x128xf32>
    %429 = vector.shape_cast %428 : vector<1x1x2x128xf32> to vector<2x128xf32>
    %c72 = arith.constant 72 : index
    %430 = memref.load %arg2[%c72] : memref<128xf32, #tpu.memory_space<smem>>
    %431 = vector.broadcast %430 : f32 to vector<2x128xf32>
    %432 = arith.mulf %431, %429 : vector<2x128xf32>
    %433 = arith.addf %409, %432 : vector<2x128xf32>
    %c0_292 = arith.constant 0 : index
    %c9_293 = arith.constant 9 : index
    %c0_294 = arith.constant 0 : index
    %c0_295 = arith.constant 0 : index
    %434 = vector.load %arg6[%c0_292, %c9_293, %c0_294, %c0_295] : memref<1x32x2x128xf32, #tpu.memory_space<vmem>>, vector<1x1x2x128xf32>
    %435 = vector.shape_cast %434 : vector<1x1x2x128xf32> to vector<2x128xf32>
    %c73 = arith.constant 73 : index
    %436 = memref.load %arg2[%c73] : memref<128xf32, #tpu.memory_space<smem>>
    %437 = vector.broadcast %436 : f32 to vector<2x128xf32>
    %438 = arith.mulf %437, %435 : vector<2x128xf32>
    %439 = arith.addf %415, %438 : vector<2x128xf32>
    %c0_296 = arith.constant 0 : index
    %c10_297 = arith.constant 10 : index
    %c0_298 = arith.constant 0 : index
    %c0_299 = arith.constant 0 : index
    %440 = vector.load %arg6[%c0_296, %c10_297, %c0_298, %c0_299] : memref<1x32x2x128xf32, #tpu.memory_space<vmem>>, vector<1x1x2x128xf32>
    %441 = vector.shape_cast %440 : vector<1x1x2x128xf32> to vector<2x128xf32>
    %c74 = arith.constant 74 : index
    %442 = memref.load %arg2[%c74] : memref<128xf32, #tpu.memory_space<smem>>
    %443 = vector.broadcast %442 : f32 to vector<2x128xf32>
    %444 = arith.mulf %443, %441 : vector<2x128xf32>
    %445 = arith.addf %421, %444 : vector<2x128xf32>
    %c0_300 = arith.constant 0 : index
    %c11_301 = arith.constant 11 : index
    %c0_302 = arith.constant 0 : index
    %c0_303 = arith.constant 0 : index
    %446 = vector.load %arg6[%c0_300, %c11_301, %c0_302, %c0_303] : memref<1x32x2x128xf32, #tpu.memory_space<vmem>>, vector<1x1x2x128xf32>
    %447 = vector.shape_cast %446 : vector<1x1x2x128xf32> to vector<2x128xf32>
    %c75 = arith.constant 75 : index
    %448 = memref.load %arg2[%c75] : memref<128xf32, #tpu.memory_space<smem>>
    %449 = vector.broadcast %448 : f32 to vector<2x128xf32>
    %450 = arith.mulf %449, %447 : vector<2x128xf32>
    %451 = arith.addf %427, %450 : vector<2x128xf32>
    %c0_304 = arith.constant 0 : index
    %c12_305 = arith.constant 12 : index
    %c0_306 = arith.constant 0 : index
    %c0_307 = arith.constant 0 : index
    %452 = vector.load %arg6[%c0_304, %c12_305, %c0_306, %c0_307] : memref<1x32x2x128xf32, #tpu.memory_space<vmem>>, vector<1x1x2x128xf32>
    %453 = vector.shape_cast %452 : vector<1x1x2x128xf32> to vector<2x128xf32>
    %c76 = arith.constant 76 : index
    %454 = memref.load %arg2[%c76] : memref<128xf32, #tpu.memory_space<smem>>
    %455 = vector.broadcast %454 : f32 to vector<2x128xf32>
    %456 = arith.mulf %455, %453 : vector<2x128xf32>
    %457 = arith.addf %433, %456 : vector<2x128xf32>
    %c0_308 = arith.constant 0 : index
    %c13_309 = arith.constant 13 : index
    %c0_310 = arith.constant 0 : index
    %c0_311 = arith.constant 0 : index
    %458 = vector.load %arg6[%c0_308, %c13_309, %c0_310, %c0_311] : memref<1x32x2x128xf32, #tpu.memory_space<vmem>>, vector<1x1x2x128xf32>
    %459 = vector.shape_cast %458 : vector<1x1x2x128xf32> to vector<2x128xf32>
    %c77 = arith.constant 77 : index
    %460 = memref.load %arg2[%c77] : memref<128xf32, #tpu.memory_space<smem>>
    %461 = vector.broadcast %460 : f32 to vector<2x128xf32>
    %462 = arith.mulf %461, %459 : vector<2x128xf32>
    %463 = arith.addf %439, %462 : vector<2x128xf32>
    %c0_312 = arith.constant 0 : index
    %c14_313 = arith.constant 14 : index
    %c0_314 = arith.constant 0 : index
    %c0_315 = arith.constant 0 : index
    %464 = vector.load %arg6[%c0_312, %c14_313, %c0_314, %c0_315] : memref<1x32x2x128xf32, #tpu.memory_space<vmem>>, vector<1x1x2x128xf32>
    %465 = vector.shape_cast %464 : vector<1x1x2x128xf32> to vector<2x128xf32>
    %c78 = arith.constant 78 : index
    %466 = memref.load %arg2[%c78] : memref<128xf32, #tpu.memory_space<smem>>
    %467 = vector.broadcast %466 : f32 to vector<2x128xf32>
    %468 = arith.mulf %467, %465 : vector<2x128xf32>
    %469 = arith.addf %445, %468 : vector<2x128xf32>
    %c0_316 = arith.constant 0 : index
    %c15_317 = arith.constant 15 : index
    %c0_318 = arith.constant 0 : index
    %c0_319 = arith.constant 0 : index
    %470 = vector.load %arg6[%c0_316, %c15_317, %c0_318, %c0_319] : memref<1x32x2x128xf32, #tpu.memory_space<vmem>>, vector<1x1x2x128xf32>
    %471 = vector.shape_cast %470 : vector<1x1x2x128xf32> to vector<2x128xf32>
    %c79 = arith.constant 79 : index
    %472 = memref.load %arg2[%c79] : memref<128xf32, #tpu.memory_space<smem>>
    %473 = vector.broadcast %472 : f32 to vector<2x128xf32>
    %474 = arith.mulf %473, %471 : vector<2x128xf32>
    %475 = arith.addf %451, %474 : vector<2x128xf32>
    %c0_320 = arith.constant 0 : index
    %c16_321 = arith.constant 16 : index
    %c0_322 = arith.constant 0 : index
    %c0_323 = arith.constant 0 : index
    %476 = vector.load %arg6[%c0_320, %c16_321, %c0_322, %c0_323] : memref<1x32x2x128xf32, #tpu.memory_space<vmem>>, vector<1x1x2x128xf32>
    %477 = vector.shape_cast %476 : vector<1x1x2x128xf32> to vector<2x128xf32>
    %c80 = arith.constant 80 : index
    %478 = memref.load %arg2[%c80] : memref<128xf32, #tpu.memory_space<smem>>
    %479 = vector.broadcast %478 : f32 to vector<2x128xf32>
    %480 = arith.mulf %479, %477 : vector<2x128xf32>
    %481 = arith.addf %457, %480 : vector<2x128xf32>
    %c0_324 = arith.constant 0 : index
    %c17_325 = arith.constant 17 : index
    %c0_326 = arith.constant 0 : index
    %c0_327 = arith.constant 0 : index
    %482 = vector.load %arg6[%c0_324, %c17_325, %c0_326, %c0_327] : memref<1x32x2x128xf32, #tpu.memory_space<vmem>>, vector<1x1x2x128xf32>
    %483 = vector.shape_cast %482 : vector<1x1x2x128xf32> to vector<2x128xf32>
    %c81 = arith.constant 81 : index
    %484 = memref.load %arg2[%c81] : memref<128xf32, #tpu.memory_space<smem>>
    %485 = vector.broadcast %484 : f32 to vector<2x128xf32>
    %486 = arith.mulf %485, %483 : vector<2x128xf32>
    %487 = arith.addf %463, %486 : vector<2x128xf32>
    %c0_328 = arith.constant 0 : index
    %c18_329 = arith.constant 18 : index
    %c0_330 = arith.constant 0 : index
    %c0_331 = arith.constant 0 : index
    %488 = vector.load %arg6[%c0_328, %c18_329, %c0_330, %c0_331] : memref<1x32x2x128xf32, #tpu.memory_space<vmem>>, vector<1x1x2x128xf32>
    %489 = vector.shape_cast %488 : vector<1x1x2x128xf32> to vector<2x128xf32>
    %c82 = arith.constant 82 : index
    %490 = memref.load %arg2[%c82] : memref<128xf32, #tpu.memory_space<smem>>
    %491 = vector.broadcast %490 : f32 to vector<2x128xf32>
    %492 = arith.mulf %491, %489 : vector<2x128xf32>
    %493 = arith.addf %469, %492 : vector<2x128xf32>
    %c0_332 = arith.constant 0 : index
    %c19_333 = arith.constant 19 : index
    %c0_334 = arith.constant 0 : index
    %c0_335 = arith.constant 0 : index
    %494 = vector.load %arg6[%c0_332, %c19_333, %c0_334, %c0_335] : memref<1x32x2x128xf32, #tpu.memory_space<vmem>>, vector<1x1x2x128xf32>
    %495 = vector.shape_cast %494 : vector<1x1x2x128xf32> to vector<2x128xf32>
    %c83 = arith.constant 83 : index
    %496 = memref.load %arg2[%c83] : memref<128xf32, #tpu.memory_space<smem>>
    %497 = vector.broadcast %496 : f32 to vector<2x128xf32>
    %498 = arith.mulf %497, %495 : vector<2x128xf32>
    %499 = arith.addf %475, %498 : vector<2x128xf32>
    %c0_336 = arith.constant 0 : index
    %c20_337 = arith.constant 20 : index
    %c0_338 = arith.constant 0 : index
    %c0_339 = arith.constant 0 : index
    %500 = vector.load %arg6[%c0_336, %c20_337, %c0_338, %c0_339] : memref<1x32x2x128xf32, #tpu.memory_space<vmem>>, vector<1x1x2x128xf32>
    %501 = vector.shape_cast %500 : vector<1x1x2x128xf32> to vector<2x128xf32>
    %c84 = arith.constant 84 : index
    %502 = memref.load %arg2[%c84] : memref<128xf32, #tpu.memory_space<smem>>
    %503 = vector.broadcast %502 : f32 to vector<2x128xf32>
    %504 = arith.mulf %503, %501 : vector<2x128xf32>
    %505 = arith.addf %481, %504 : vector<2x128xf32>
    %c0_340 = arith.constant 0 : index
    %c21_341 = arith.constant 21 : index
    %c0_342 = arith.constant 0 : index
    %c0_343 = arith.constant 0 : index
    %506 = vector.load %arg6[%c0_340, %c21_341, %c0_342, %c0_343] : memref<1x32x2x128xf32, #tpu.memory_space<vmem>>, vector<1x1x2x128xf32>
    %507 = vector.shape_cast %506 : vector<1x1x2x128xf32> to vector<2x128xf32>
    %c85 = arith.constant 85 : index
    %508 = memref.load %arg2[%c85] : memref<128xf32, #tpu.memory_space<smem>>
    %509 = vector.broadcast %508 : f32 to vector<2x128xf32>
    %510 = arith.mulf %509, %507 : vector<2x128xf32>
    %511 = arith.addf %487, %510 : vector<2x128xf32>
    %c0_344 = arith.constant 0 : index
    %c22_345 = arith.constant 22 : index
    %c0_346 = arith.constant 0 : index
    %c0_347 = arith.constant 0 : index
    %512 = vector.load %arg6[%c0_344, %c22_345, %c0_346, %c0_347] : memref<1x32x2x128xf32, #tpu.memory_space<vmem>>, vector<1x1x2x128xf32>
    %513 = vector.shape_cast %512 : vector<1x1x2x128xf32> to vector<2x128xf32>
    %c86 = arith.constant 86 : index
    %514 = memref.load %arg2[%c86] : memref<128xf32, #tpu.memory_space<smem>>
    %515 = vector.broadcast %514 : f32 to vector<2x128xf32>
    %516 = arith.mulf %515, %513 : vector<2x128xf32>
    %517 = arith.addf %493, %516 : vector<2x128xf32>
    %c0_348 = arith.constant 0 : index
    %c23_349 = arith.constant 23 : index
    %c0_350 = arith.constant 0 : index
    %c0_351 = arith.constant 0 : index
    %518 = vector.load %arg6[%c0_348, %c23_349, %c0_350, %c0_351] : memref<1x32x2x128xf32, #tpu.memory_space<vmem>>, vector<1x1x2x128xf32>
    %519 = vector.shape_cast %518 : vector<1x1x2x128xf32> to vector<2x128xf32>
    %c87 = arith.constant 87 : index
    %520 = memref.load %arg2[%c87] : memref<128xf32, #tpu.memory_space<smem>>
    %521 = vector.broadcast %520 : f32 to vector<2x128xf32>
    %522 = arith.mulf %521, %519 : vector<2x128xf32>
    %523 = arith.addf %499, %522 : vector<2x128xf32>
    %c0_352 = arith.constant 0 : index
    %c24_353 = arith.constant 24 : index
    %c0_354 = arith.constant 0 : index
    %c0_355 = arith.constant 0 : index
    %524 = vector.load %arg6[%c0_352, %c24_353, %c0_354, %c0_355] : memref<1x32x2x128xf32, #tpu.memory_space<vmem>>, vector<1x1x2x128xf32>
    %525 = vector.shape_cast %524 : vector<1x1x2x128xf32> to vector<2x128xf32>
    %c88 = arith.constant 88 : index
    %526 = memref.load %arg2[%c88] : memref<128xf32, #tpu.memory_space<smem>>
    %527 = vector.broadcast %526 : f32 to vector<2x128xf32>
    %528 = arith.mulf %527, %525 : vector<2x128xf32>
    %529 = arith.addf %505, %528 : vector<2x128xf32>
    %c0_356 = arith.constant 0 : index
    %c25_357 = arith.constant 25 : index
    %c0_358 = arith.constant 0 : index
    %c0_359 = arith.constant 0 : index
    %530 = vector.load %arg6[%c0_356, %c25_357, %c0_358, %c0_359] : memref<1x32x2x128xf32, #tpu.memory_space<vmem>>, vector<1x1x2x128xf32>
    %531 = vector.shape_cast %530 : vector<1x1x2x128xf32> to vector<2x128xf32>
    %c89 = arith.constant 89 : index
    %532 = memref.load %arg2[%c89] : memref<128xf32, #tpu.memory_space<smem>>
    %533 = vector.broadcast %532 : f32 to vector<2x128xf32>
    %534 = arith.mulf %533, %531 : vector<2x128xf32>
    %535 = arith.addf %511, %534 : vector<2x128xf32>
    %c0_360 = arith.constant 0 : index
    %c26_361 = arith.constant 26 : index
    %c0_362 = arith.constant 0 : index
    %c0_363 = arith.constant 0 : index
    %536 = vector.load %arg6[%c0_360, %c26_361, %c0_362, %c0_363] : memref<1x32x2x128xf32, #tpu.memory_space<vmem>>, vector<1x1x2x128xf32>
    %537 = vector.shape_cast %536 : vector<1x1x2x128xf32> to vector<2x128xf32>
    %c90 = arith.constant 90 : index
    %538 = memref.load %arg2[%c90] : memref<128xf32, #tpu.memory_space<smem>>
    %539 = vector.broadcast %538 : f32 to vector<2x128xf32>
    %540 = arith.mulf %539, %537 : vector<2x128xf32>
    %541 = arith.addf %517, %540 : vector<2x128xf32>
    %c0_364 = arith.constant 0 : index
    %c27_365 = arith.constant 27 : index
    %c0_366 = arith.constant 0 : index
    %c0_367 = arith.constant 0 : index
    %542 = vector.load %arg6[%c0_364, %c27_365, %c0_366, %c0_367] : memref<1x32x2x128xf32, #tpu.memory_space<vmem>>, vector<1x1x2x128xf32>
    %543 = vector.shape_cast %542 : vector<1x1x2x128xf32> to vector<2x128xf32>
    %c91 = arith.constant 91 : index
    %544 = memref.load %arg2[%c91] : memref<128xf32, #tpu.memory_space<smem>>
    %545 = vector.broadcast %544 : f32 to vector<2x128xf32>
    %546 = arith.mulf %545, %543 : vector<2x128xf32>
    %547 = arith.addf %523, %546 : vector<2x128xf32>
    %c0_368 = arith.constant 0 : index
    %c28_369 = arith.constant 28 : index
    %c0_370 = arith.constant 0 : index
    %c0_371 = arith.constant 0 : index
    %548 = vector.load %arg6[%c0_368, %c28_369, %c0_370, %c0_371] : memref<1x32x2x128xf32, #tpu.memory_space<vmem>>, vector<1x1x2x128xf32>
    %549 = vector.shape_cast %548 : vector<1x1x2x128xf32> to vector<2x128xf32>
    %c92 = arith.constant 92 : index
    %550 = memref.load %arg2[%c92] : memref<128xf32, #tpu.memory_space<smem>>
    %551 = vector.broadcast %550 : f32 to vector<2x128xf32>
    %552 = arith.mulf %551, %549 : vector<2x128xf32>
    %553 = arith.addf %529, %552 : vector<2x128xf32>
    %c0_372 = arith.constant 0 : index
    %c29_373 = arith.constant 29 : index
    %c0_374 = arith.constant 0 : index
    %c0_375 = arith.constant 0 : index
    %554 = vector.load %arg6[%c0_372, %c29_373, %c0_374, %c0_375] : memref<1x32x2x128xf32, #tpu.memory_space<vmem>>, vector<1x1x2x128xf32>
    %555 = vector.shape_cast %554 : vector<1x1x2x128xf32> to vector<2x128xf32>
    %c93 = arith.constant 93 : index
    %556 = memref.load %arg2[%c93] : memref<128xf32, #tpu.memory_space<smem>>
    %557 = vector.broadcast %556 : f32 to vector<2x128xf32>
    %558 = arith.mulf %557, %555 : vector<2x128xf32>
    %559 = arith.addf %535, %558 : vector<2x128xf32>
    %c0_376 = arith.constant 0 : index
    %c30_377 = arith.constant 30 : index
    %c0_378 = arith.constant 0 : index
    %c0_379 = arith.constant 0 : index
    %560 = vector.load %arg6[%c0_376, %c30_377, %c0_378, %c0_379] : memref<1x32x2x128xf32, #tpu.memory_space<vmem>>, vector<1x1x2x128xf32>
    %561 = vector.shape_cast %560 : vector<1x1x2x128xf32> to vector<2x128xf32>
    %c94 = arith.constant 94 : index
    %562 = memref.load %arg2[%c94] : memref<128xf32, #tpu.memory_space<smem>>
    %563 = vector.broadcast %562 : f32 to vector<2x128xf32>
    %564 = arith.mulf %563, %561 : vector<2x128xf32>
    %565 = arith.addf %541, %564 : vector<2x128xf32>
    %c0_380 = arith.constant 0 : index
    %c31_381 = arith.constant 31 : index
    %c0_382 = arith.constant 0 : index
    %c0_383 = arith.constant 0 : index
    %566 = vector.load %arg6[%c0_380, %c31_381, %c0_382, %c0_383] : memref<1x32x2x128xf32, #tpu.memory_space<vmem>>, vector<1x1x2x128xf32>
    %567 = vector.shape_cast %566 : vector<1x1x2x128xf32> to vector<2x128xf32>
    %c95 = arith.constant 95 : index
    %568 = memref.load %arg2[%c95] : memref<128xf32, #tpu.memory_space<smem>>
    %569 = vector.broadcast %568 : f32 to vector<2x128xf32>
    %570 = arith.mulf %569, %567 : vector<2x128xf32>
    %571 = arith.addf %547, %570 : vector<2x128xf32>
    %c0_384 = arith.constant 0 : index
    %c0_385 = arith.constant 0 : index
    %c0_386 = arith.constant 0 : index
    %c0_387 = arith.constant 0 : index
    %572 = vector.load %arg7[%c0_384, %c0_385, %c0_386, %c0_387] : memref<1x32x2x128xf32, #tpu.memory_space<vmem>>, vector<1x1x2x128xf32>
    %573 = vector.shape_cast %572 : vector<1x1x2x128xf32> to vector<2x128xf32>
    %c96 = arith.constant 96 : index
    %574 = memref.load %arg2[%c96] : memref<128xf32, #tpu.memory_space<smem>>
    %575 = vector.broadcast %574 : f32 to vector<2x128xf32>
    %576 = arith.mulf %575, %573 : vector<2x128xf32>
    %577 = arith.addf %553, %576 : vector<2x128xf32>
    %c0_388 = arith.constant 0 : index
    %c1_389 = arith.constant 1 : index
    %c0_390 = arith.constant 0 : index
    %c0_391 = arith.constant 0 : index
    %578 = vector.load %arg7[%c0_388, %c1_389, %c0_390, %c0_391] : memref<1x32x2x128xf32, #tpu.memory_space<vmem>>, vector<1x1x2x128xf32>
    %579 = vector.shape_cast %578 : vector<1x1x2x128xf32> to vector<2x128xf32>
    %c97 = arith.constant 97 : index
    %580 = memref.load %arg2[%c97] : memref<128xf32, #tpu.memory_space<smem>>
    %581 = vector.broadcast %580 : f32 to vector<2x128xf32>
    %582 = arith.mulf %581, %579 : vector<2x128xf32>
    %583 = arith.addf %559, %582 : vector<2x128xf32>
    %c0_392 = arith.constant 0 : index
    %c2_393 = arith.constant 2 : index
    %c0_394 = arith.constant 0 : index
    %c0_395 = arith.constant 0 : index
    %584 = vector.load %arg7[%c0_392, %c2_393, %c0_394, %c0_395] : memref<1x32x2x128xf32, #tpu.memory_space<vmem>>, vector<1x1x2x128xf32>
    %585 = vector.shape_cast %584 : vector<1x1x2x128xf32> to vector<2x128xf32>
    %c98 = arith.constant 98 : index
    %586 = memref.load %arg2[%c98] : memref<128xf32, #tpu.memory_space<smem>>
    %587 = vector.broadcast %586 : f32 to vector<2x128xf32>
    %588 = arith.mulf %587, %585 : vector<2x128xf32>
    %589 = arith.addf %565, %588 : vector<2x128xf32>
    %c0_396 = arith.constant 0 : index
    %c3_397 = arith.constant 3 : index
    %c0_398 = arith.constant 0 : index
    %c0_399 = arith.constant 0 : index
    %590 = vector.load %arg7[%c0_396, %c3_397, %c0_398, %c0_399] : memref<1x32x2x128xf32, #tpu.memory_space<vmem>>, vector<1x1x2x128xf32>
    %591 = vector.shape_cast %590 : vector<1x1x2x128xf32> to vector<2x128xf32>
    %c99 = arith.constant 99 : index
    %592 = memref.load %arg2[%c99] : memref<128xf32, #tpu.memory_space<smem>>
    %593 = vector.broadcast %592 : f32 to vector<2x128xf32>
    %594 = arith.mulf %593, %591 : vector<2x128xf32>
    %595 = arith.addf %571, %594 : vector<2x128xf32>
    %c0_400 = arith.constant 0 : index
    %c4_401 = arith.constant 4 : index
    %c0_402 = arith.constant 0 : index
    %c0_403 = arith.constant 0 : index
    %596 = vector.load %arg7[%c0_400, %c4_401, %c0_402, %c0_403] : memref<1x32x2x128xf32, #tpu.memory_space<vmem>>, vector<1x1x2x128xf32>
    %597 = vector.shape_cast %596 : vector<1x1x2x128xf32> to vector<2x128xf32>
    %c100 = arith.constant 100 : index
    %598 = memref.load %arg2[%c100] : memref<128xf32, #tpu.memory_space<smem>>
    %599 = vector.broadcast %598 : f32 to vector<2x128xf32>
    %600 = arith.mulf %599, %597 : vector<2x128xf32>
    %601 = arith.addf %577, %600 : vector<2x128xf32>
    %c0_404 = arith.constant 0 : index
    %c5_405 = arith.constant 5 : index
    %c0_406 = arith.constant 0 : index
    %c0_407 = arith.constant 0 : index
    %602 = vector.load %arg7[%c0_404, %c5_405, %c0_406, %c0_407] : memref<1x32x2x128xf32, #tpu.memory_space<vmem>>, vector<1x1x2x128xf32>
    %603 = vector.shape_cast %602 : vector<1x1x2x128xf32> to vector<2x128xf32>
    %c101 = arith.constant 101 : index
    %604 = memref.load %arg2[%c101] : memref<128xf32, #tpu.memory_space<smem>>
    %605 = vector.broadcast %604 : f32 to vector<2x128xf32>
    %606 = arith.mulf %605, %603 : vector<2x128xf32>
    %607 = arith.addf %583, %606 : vector<2x128xf32>
    %c0_408 = arith.constant 0 : index
    %c6_409 = arith.constant 6 : index
    %c0_410 = arith.constant 0 : index
    %c0_411 = arith.constant 0 : index
    %608 = vector.load %arg7[%c0_408, %c6_409, %c0_410, %c0_411] : memref<1x32x2x128xf32, #tpu.memory_space<vmem>>, vector<1x1x2x128xf32>
    %609 = vector.shape_cast %608 : vector<1x1x2x128xf32> to vector<2x128xf32>
    %c102 = arith.constant 102 : index
    %610 = memref.load %arg2[%c102] : memref<128xf32, #tpu.memory_space<smem>>
    %611 = vector.broadcast %610 : f32 to vector<2x128xf32>
    %612 = arith.mulf %611, %609 : vector<2x128xf32>
    %613 = arith.addf %589, %612 : vector<2x128xf32>
    %c0_412 = arith.constant 0 : index
    %c7_413 = arith.constant 7 : index
    %c0_414 = arith.constant 0 : index
    %c0_415 = arith.constant 0 : index
    %614 = vector.load %arg7[%c0_412, %c7_413, %c0_414, %c0_415] : memref<1x32x2x128xf32, #tpu.memory_space<vmem>>, vector<1x1x2x128xf32>
    %615 = vector.shape_cast %614 : vector<1x1x2x128xf32> to vector<2x128xf32>
    %c103 = arith.constant 103 : index
    %616 = memref.load %arg2[%c103] : memref<128xf32, #tpu.memory_space<smem>>
    %617 = vector.broadcast %616 : f32 to vector<2x128xf32>
    %618 = arith.mulf %617, %615 : vector<2x128xf32>
    %619 = arith.addf %595, %618 : vector<2x128xf32>
    %c0_416 = arith.constant 0 : index
    %c8_417 = arith.constant 8 : index
    %c0_418 = arith.constant 0 : index
    %c0_419 = arith.constant 0 : index
    %620 = vector.load %arg7[%c0_416, %c8_417, %c0_418, %c0_419] : memref<1x32x2x128xf32, #tpu.memory_space<vmem>>, vector<1x1x2x128xf32>
    %621 = vector.shape_cast %620 : vector<1x1x2x128xf32> to vector<2x128xf32>
    %c104 = arith.constant 104 : index
    %622 = memref.load %arg2[%c104] : memref<128xf32, #tpu.memory_space<smem>>
    %623 = vector.broadcast %622 : f32 to vector<2x128xf32>
    %624 = arith.mulf %623, %621 : vector<2x128xf32>
    %625 = arith.addf %601, %624 : vector<2x128xf32>
    %c0_420 = arith.constant 0 : index
    %c9_421 = arith.constant 9 : index
    %c0_422 = arith.constant 0 : index
    %c0_423 = arith.constant 0 : index
    %626 = vector.load %arg7[%c0_420, %c9_421, %c0_422, %c0_423] : memref<1x32x2x128xf32, #tpu.memory_space<vmem>>, vector<1x1x2x128xf32>
    %627 = vector.shape_cast %626 : vector<1x1x2x128xf32> to vector<2x128xf32>
    %c105 = arith.constant 105 : index
    %628 = memref.load %arg2[%c105] : memref<128xf32, #tpu.memory_space<smem>>
    %629 = vector.broadcast %628 : f32 to vector<2x128xf32>
    %630 = arith.mulf %629, %627 : vector<2x128xf32>
    %631 = arith.addf %607, %630 : vector<2x128xf32>
    %c0_424 = arith.constant 0 : index
    %c10_425 = arith.constant 10 : index
    %c0_426 = arith.constant 0 : index
    %c0_427 = arith.constant 0 : index
    %632 = vector.load %arg7[%c0_424, %c10_425, %c0_426, %c0_427] : memref<1x32x2x128xf32, #tpu.memory_space<vmem>>, vector<1x1x2x128xf32>
    %633 = vector.shape_cast %632 : vector<1x1x2x128xf32> to vector<2x128xf32>
    %c106 = arith.constant 106 : index
    %634 = memref.load %arg2[%c106] : memref<128xf32, #tpu.memory_space<smem>>
    %635 = vector.broadcast %634 : f32 to vector<2x128xf32>
    %636 = arith.mulf %635, %633 : vector<2x128xf32>
    %637 = arith.addf %613, %636 : vector<2x128xf32>
    %c0_428 = arith.constant 0 : index
    %c11_429 = arith.constant 11 : index
    %c0_430 = arith.constant 0 : index
    %c0_431 = arith.constant 0 : index
    %638 = vector.load %arg7[%c0_428, %c11_429, %c0_430, %c0_431] : memref<1x32x2x128xf32, #tpu.memory_space<vmem>>, vector<1x1x2x128xf32>
    %639 = vector.shape_cast %638 : vector<1x1x2x128xf32> to vector<2x128xf32>
    %c107 = arith.constant 107 : index
    %640 = memref.load %arg2[%c107] : memref<128xf32, #tpu.memory_space<smem>>
    %641 = vector.broadcast %640 : f32 to vector<2x128xf32>
    %642 = arith.mulf %641, %639 : vector<2x128xf32>
    %643 = arith.addf %619, %642 : vector<2x128xf32>
    %c0_432 = arith.constant 0 : index
    %c12_433 = arith.constant 12 : index
    %c0_434 = arith.constant 0 : index
    %c0_435 = arith.constant 0 : index
    %644 = vector.load %arg7[%c0_432, %c12_433, %c0_434, %c0_435] : memref<1x32x2x128xf32, #tpu.memory_space<vmem>>, vector<1x1x2x128xf32>
    %645 = vector.shape_cast %644 : vector<1x1x2x128xf32> to vector<2x128xf32>
    %c108 = arith.constant 108 : index
    %646 = memref.load %arg2[%c108] : memref<128xf32, #tpu.memory_space<smem>>
    %647 = vector.broadcast %646 : f32 to vector<2x128xf32>
    %648 = arith.mulf %647, %645 : vector<2x128xf32>
    %649 = arith.addf %625, %648 : vector<2x128xf32>
    %c0_436 = arith.constant 0 : index
    %c13_437 = arith.constant 13 : index
    %c0_438 = arith.constant 0 : index
    %c0_439 = arith.constant 0 : index
    %650 = vector.load %arg7[%c0_436, %c13_437, %c0_438, %c0_439] : memref<1x32x2x128xf32, #tpu.memory_space<vmem>>, vector<1x1x2x128xf32>
    %651 = vector.shape_cast %650 : vector<1x1x2x128xf32> to vector<2x128xf32>
    %c109 = arith.constant 109 : index
    %652 = memref.load %arg2[%c109] : memref<128xf32, #tpu.memory_space<smem>>
    %653 = vector.broadcast %652 : f32 to vector<2x128xf32>
    %654 = arith.mulf %653, %651 : vector<2x128xf32>
    %655 = arith.addf %631, %654 : vector<2x128xf32>
    %c0_440 = arith.constant 0 : index
    %c14_441 = arith.constant 14 : index
    %c0_442 = arith.constant 0 : index
    %c0_443 = arith.constant 0 : index
    %656 = vector.load %arg7[%c0_440, %c14_441, %c0_442, %c0_443] : memref<1x32x2x128xf32, #tpu.memory_space<vmem>>, vector<1x1x2x128xf32>
    %657 = vector.shape_cast %656 : vector<1x1x2x128xf32> to vector<2x128xf32>
    %c110 = arith.constant 110 : index
    %658 = memref.load %arg2[%c110] : memref<128xf32, #tpu.memory_space<smem>>
    %659 = vector.broadcast %658 : f32 to vector<2x128xf32>
    %660 = arith.mulf %659, %657 : vector<2x128xf32>
    %661 = arith.addf %637, %660 : vector<2x128xf32>
    %c0_444 = arith.constant 0 : index
    %c15_445 = arith.constant 15 : index
    %c0_446 = arith.constant 0 : index
    %c0_447 = arith.constant 0 : index
    %662 = vector.load %arg7[%c0_444, %c15_445, %c0_446, %c0_447] : memref<1x32x2x128xf32, #tpu.memory_space<vmem>>, vector<1x1x2x128xf32>
    %663 = vector.shape_cast %662 : vector<1x1x2x128xf32> to vector<2x128xf32>
    %c111 = arith.constant 111 : index
    %664 = memref.load %arg2[%c111] : memref<128xf32, #tpu.memory_space<smem>>
    %665 = vector.broadcast %664 : f32 to vector<2x128xf32>
    %666 = arith.mulf %665, %663 : vector<2x128xf32>
    %667 = arith.addf %643, %666 : vector<2x128xf32>
    %c0_448 = arith.constant 0 : index
    %c16_449 = arith.constant 16 : index
    %c0_450 = arith.constant 0 : index
    %c0_451 = arith.constant 0 : index
    %668 = vector.load %arg7[%c0_448, %c16_449, %c0_450, %c0_451] : memref<1x32x2x128xf32, #tpu.memory_space<vmem>>, vector<1x1x2x128xf32>
    %669 = vector.shape_cast %668 : vector<1x1x2x128xf32> to vector<2x128xf32>
    %c112 = arith.constant 112 : index
    %670 = memref.load %arg2[%c112] : memref<128xf32, #tpu.memory_space<smem>>
    %671 = vector.broadcast %670 : f32 to vector<2x128xf32>
    %672 = arith.mulf %671, %669 : vector<2x128xf32>
    %673 = arith.addf %649, %672 : vector<2x128xf32>
    %c0_452 = arith.constant 0 : index
    %c17_453 = arith.constant 17 : index
    %c0_454 = arith.constant 0 : index
    %c0_455 = arith.constant 0 : index
    %674 = vector.load %arg7[%c0_452, %c17_453, %c0_454, %c0_455] : memref<1x32x2x128xf32, #tpu.memory_space<vmem>>, vector<1x1x2x128xf32>
    %675 = vector.shape_cast %674 : vector<1x1x2x128xf32> to vector<2x128xf32>
    %c113 = arith.constant 113 : index
    %676 = memref.load %arg2[%c113] : memref<128xf32, #tpu.memory_space<smem>>
    %677 = vector.broadcast %676 : f32 to vector<2x128xf32>
    %678 = arith.mulf %677, %675 : vector<2x128xf32>
    %679 = arith.addf %655, %678 : vector<2x128xf32>
    %c0_456 = arith.constant 0 : index
    %c18_457 = arith.constant 18 : index
    %c0_458 = arith.constant 0 : index
    %c0_459 = arith.constant 0 : index
    %680 = vector.load %arg7[%c0_456, %c18_457, %c0_458, %c0_459] : memref<1x32x2x128xf32, #tpu.memory_space<vmem>>, vector<1x1x2x128xf32>
    %681 = vector.shape_cast %680 : vector<1x1x2x128xf32> to vector<2x128xf32>
    %c114 = arith.constant 114 : index
    %682 = memref.load %arg2[%c114] : memref<128xf32, #tpu.memory_space<smem>>
    %683 = vector.broadcast %682 : f32 to vector<2x128xf32>
    %684 = arith.mulf %683, %681 : vector<2x128xf32>
    %685 = arith.addf %661, %684 : vector<2x128xf32>
    %c0_460 = arith.constant 0 : index
    %c19_461 = arith.constant 19 : index
    %c0_462 = arith.constant 0 : index
    %c0_463 = arith.constant 0 : index
    %686 = vector.load %arg7[%c0_460, %c19_461, %c0_462, %c0_463] : memref<1x32x2x128xf32, #tpu.memory_space<vmem>>, vector<1x1x2x128xf32>
    %687 = vector.shape_cast %686 : vector<1x1x2x128xf32> to vector<2x128xf32>
    %c115 = arith.constant 115 : index
    %688 = memref.load %arg2[%c115] : memref<128xf32, #tpu.memory_space<smem>>
    %689 = vector.broadcast %688 : f32 to vector<2x128xf32>
    %690 = arith.mulf %689, %687 : vector<2x128xf32>
    %691 = arith.addf %667, %690 : vector<2x128xf32>
    %c0_464 = arith.constant 0 : index
    %c20_465 = arith.constant 20 : index
    %c0_466 = arith.constant 0 : index
    %c0_467 = arith.constant 0 : index
    %692 = vector.load %arg7[%c0_464, %c20_465, %c0_466, %c0_467] : memref<1x32x2x128xf32, #tpu.memory_space<vmem>>, vector<1x1x2x128xf32>
    %693 = vector.shape_cast %692 : vector<1x1x2x128xf32> to vector<2x128xf32>
    %c116 = arith.constant 116 : index
    %694 = memref.load %arg2[%c116] : memref<128xf32, #tpu.memory_space<smem>>
    %695 = vector.broadcast %694 : f32 to vector<2x128xf32>
    %696 = arith.mulf %695, %693 : vector<2x128xf32>
    %697 = arith.addf %673, %696 : vector<2x128xf32>
    %c0_468 = arith.constant 0 : index
    %c21_469 = arith.constant 21 : index
    %c0_470 = arith.constant 0 : index
    %c0_471 = arith.constant 0 : index
    %698 = vector.load %arg7[%c0_468, %c21_469, %c0_470, %c0_471] : memref<1x32x2x128xf32, #tpu.memory_space<vmem>>, vector<1x1x2x128xf32>
    %699 = vector.shape_cast %698 : vector<1x1x2x128xf32> to vector<2x128xf32>
    %c117 = arith.constant 117 : index
    %700 = memref.load %arg2[%c117] : memref<128xf32, #tpu.memory_space<smem>>
    %701 = vector.broadcast %700 : f32 to vector<2x128xf32>
    %702 = arith.mulf %701, %699 : vector<2x128xf32>
    %703 = arith.addf %679, %702 : vector<2x128xf32>
    %c0_472 = arith.constant 0 : index
    %c22_473 = arith.constant 22 : index
    %c0_474 = arith.constant 0 : index
    %c0_475 = arith.constant 0 : index
    %704 = vector.load %arg7[%c0_472, %c22_473, %c0_474, %c0_475] : memref<1x32x2x128xf32, #tpu.memory_space<vmem>>, vector<1x1x2x128xf32>
    %705 = vector.shape_cast %704 : vector<1x1x2x128xf32> to vector<2x128xf32>
    %c118 = arith.constant 118 : index
    %706 = memref.load %arg2[%c118] : memref<128xf32, #tpu.memory_space<smem>>
    %707 = vector.broadcast %706 : f32 to vector<2x128xf32>
    %708 = arith.mulf %707, %705 : vector<2x128xf32>
    %709 = arith.addf %685, %708 : vector<2x128xf32>
    %c0_476 = arith.constant 0 : index
    %c23_477 = arith.constant 23 : index
    %c0_478 = arith.constant 0 : index
    %c0_479 = arith.constant 0 : index
    %710 = vector.load %arg7[%c0_476, %c23_477, %c0_478, %c0_479] : memref<1x32x2x128xf32, #tpu.memory_space<vmem>>, vector<1x1x2x128xf32>
    %711 = vector.shape_cast %710 : vector<1x1x2x128xf32> to vector<2x128xf32>
    %c119 = arith.constant 119 : index
    %712 = memref.load %arg2[%c119] : memref<128xf32, #tpu.memory_space<smem>>
    %713 = vector.broadcast %712 : f32 to vector<2x128xf32>
    %714 = arith.mulf %713, %711 : vector<2x128xf32>
    %715 = arith.addf %691, %714 : vector<2x128xf32>
    %c0_480 = arith.constant 0 : index
    %c24_481 = arith.constant 24 : index
    %c0_482 = arith.constant 0 : index
    %c0_483 = arith.constant 0 : index
    %716 = vector.load %arg7[%c0_480, %c24_481, %c0_482, %c0_483] : memref<1x32x2x128xf32, #tpu.memory_space<vmem>>, vector<1x1x2x128xf32>
    %717 = vector.shape_cast %716 : vector<1x1x2x128xf32> to vector<2x128xf32>
    %c120 = arith.constant 120 : index
    %718 = memref.load %arg2[%c120] : memref<128xf32, #tpu.memory_space<smem>>
    %719 = vector.broadcast %718 : f32 to vector<2x128xf32>
    %720 = arith.mulf %719, %717 : vector<2x128xf32>
    %721 = arith.addf %697, %720 : vector<2x128xf32>
    %c0_484 = arith.constant 0 : index
    %c25_485 = arith.constant 25 : index
    %c0_486 = arith.constant 0 : index
    %c0_487 = arith.constant 0 : index
    %722 = vector.load %arg7[%c0_484, %c25_485, %c0_486, %c0_487] : memref<1x32x2x128xf32, #tpu.memory_space<vmem>>, vector<1x1x2x128xf32>
    %723 = vector.shape_cast %722 : vector<1x1x2x128xf32> to vector<2x128xf32>
    %c121 = arith.constant 121 : index
    %724 = memref.load %arg2[%c121] : memref<128xf32, #tpu.memory_space<smem>>
    %725 = vector.broadcast %724 : f32 to vector<2x128xf32>
    %726 = arith.mulf %725, %723 : vector<2x128xf32>
    %727 = arith.addf %703, %726 : vector<2x128xf32>
    %c0_488 = arith.constant 0 : index
    %c26_489 = arith.constant 26 : index
    %c0_490 = arith.constant 0 : index
    %c0_491 = arith.constant 0 : index
    %728 = vector.load %arg7[%c0_488, %c26_489, %c0_490, %c0_491] : memref<1x32x2x128xf32, #tpu.memory_space<vmem>>, vector<1x1x2x128xf32>
    %729 = vector.shape_cast %728 : vector<1x1x2x128xf32> to vector<2x128xf32>
    %c122 = arith.constant 122 : index
    %730 = memref.load %arg2[%c122] : memref<128xf32, #tpu.memory_space<smem>>
    %731 = vector.broadcast %730 : f32 to vector<2x128xf32>
    %732 = arith.mulf %731, %729 : vector<2x128xf32>
    %733 = arith.addf %709, %732 : vector<2x128xf32>
    %c0_492 = arith.constant 0 : index
    %c27_493 = arith.constant 27 : index
    %c0_494 = arith.constant 0 : index
    %c0_495 = arith.constant 0 : index
    %734 = vector.load %arg7[%c0_492, %c27_493, %c0_494, %c0_495] : memref<1x32x2x128xf32, #tpu.memory_space<vmem>>, vector<1x1x2x128xf32>
    %735 = vector.shape_cast %734 : vector<1x1x2x128xf32> to vector<2x128xf32>
    %c123 = arith.constant 123 : index
    %736 = memref.load %arg2[%c123] : memref<128xf32, #tpu.memory_space<smem>>
    %737 = vector.broadcast %736 : f32 to vector<2x128xf32>
    %738 = arith.mulf %737, %735 : vector<2x128xf32>
    %739 = arith.addf %715, %738 : vector<2x128xf32>
    %c0_496 = arith.constant 0 : index
    %c28_497 = arith.constant 28 : index
    %c0_498 = arith.constant 0 : index
    %c0_499 = arith.constant 0 : index
    %740 = vector.load %arg7[%c0_496, %c28_497, %c0_498, %c0_499] : memref<1x32x2x128xf32, #tpu.memory_space<vmem>>, vector<1x1x2x128xf32>
    %741 = vector.shape_cast %740 : vector<1x1x2x128xf32> to vector<2x128xf32>
    %c124 = arith.constant 124 : index
    %742 = memref.load %arg2[%c124] : memref<128xf32, #tpu.memory_space<smem>>
    %743 = vector.broadcast %742 : f32 to vector<2x128xf32>
    %744 = arith.mulf %743, %741 : vector<2x128xf32>
    %745 = arith.addf %721, %744 : vector<2x128xf32>
    %c0_500 = arith.constant 0 : index
    %c29_501 = arith.constant 29 : index
    %c0_502 = arith.constant 0 : index
    %c0_503 = arith.constant 0 : index
    %746 = vector.load %arg7[%c0_500, %c29_501, %c0_502, %c0_503] : memref<1x32x2x128xf32, #tpu.memory_space<vmem>>, vector<1x1x2x128xf32>
    %747 = vector.shape_cast %746 : vector<1x1x2x128xf32> to vector<2x128xf32>
    %c125 = arith.constant 125 : index
    %748 = memref.load %arg2[%c125] : memref<128xf32, #tpu.memory_space<smem>>
    %749 = vector.broadcast %748 : f32 to vector<2x128xf32>
    %750 = arith.mulf %749, %747 : vector<2x128xf32>
    %751 = arith.addf %727, %750 : vector<2x128xf32>
    %c0_504 = arith.constant 0 : index
    %c30_505 = arith.constant 30 : index
    %c0_506 = arith.constant 0 : index
    %c0_507 = arith.constant 0 : index
    %752 = vector.load %arg7[%c0_504, %c30_505, %c0_506, %c0_507] : memref<1x32x2x128xf32, #tpu.memory_space<vmem>>, vector<1x1x2x128xf32>
    %753 = vector.shape_cast %752 : vector<1x1x2x128xf32> to vector<2x128xf32>
    %c126 = arith.constant 126 : index
    %754 = memref.load %arg2[%c126] : memref<128xf32, #tpu.memory_space<smem>>
    %755 = vector.broadcast %754 : f32 to vector<2x128xf32>
    %756 = arith.mulf %755, %753 : vector<2x128xf32>
    %757 = arith.addf %733, %756 : vector<2x128xf32>
    %c0_508 = arith.constant 0 : index
    %c31_509 = arith.constant 31 : index
    %c0_510 = arith.constant 0 : index
    %c0_511 = arith.constant 0 : index
    %758 = vector.load %arg7[%c0_508, %c31_509, %c0_510, %c0_511] : memref<1x32x2x128xf32, #tpu.memory_space<vmem>>, vector<1x1x2x128xf32>
    %759 = vector.shape_cast %758 : vector<1x1x2x128xf32> to vector<2x128xf32>
    %c127 = arith.constant 127 : index
    %760 = memref.load %arg2[%c127] : memref<128xf32, #tpu.memory_space<smem>>
    %761 = vector.broadcast %760 : f32 to vector<2x128xf32>
    %762 = arith.mulf %761, %759 : vector<2x128xf32>
    %763 = arith.addf %739, %762 : vector<2x128xf32>
    %764 = arith.addf %745, %751 : vector<2x128xf32>
    %765 = arith.addf %757, %763 : vector<2x128xf32>
    %766 = arith.addf %764, %765 : vector<2x128xf32>
    %c0_512 = arith.constant 0 : index
    %767 = memref.load %arg3[%c0_512] : memref<1xf32, #tpu.memory_space<smem>>
    %768 = vector.broadcast %767 : f32 to vector<2x128xf32>
    %769 = arith.addf %766, %768 : vector<2x128xf32>
    %cst = arith.constant 0.000000e+00 : f32
    %770 = vector.broadcast %cst : f32 to vector<2x128xf32>
    %771 = arith.subf %770, %769 : vector<2x128xf32>
    %772 = math.exp %771 : vector<2x128xf32>
    %cst_513 = arith.constant 1.000000e+00 : f32
    %773 = vector.broadcast %cst_513 : f32 to vector<2x128xf32>
    %774 = arith.addf %773, %772 : vector<2x128xf32>
    %775 = tpu.reciprocal %774 : vector<2x128xf32> -> vector<2x128xf32>
    %c0_514 = arith.constant 0 : index
    %c0_515 = arith.constant 0 : index
    %c0_516 = arith.constant 0 : index
    %c0_517 = arith.constant 0 : index
    %776 = vector.load %arg8[%c0_514, %c0_515, %c0_516, %c0_517] : memref<1x1x2x128xf32, #tpu.memory_space<vmem>>, vector<1x1x2x128xf32>
    %777 = vector.shape_cast %776 : vector<1x1x2x128xf32> to vector<2x128xf32>
    %778 = vector.shape_cast %775 : vector<2x128xf32> to vector<1x1x2x128xf32>
    tpu.vector_store %arg8[%c0_514, %c0_515, %c0_516, %c0_517], %778 {strides = array<i32>} : memref<1x1x2x128xf32, #tpu.memory_space<vmem>>, vector<1x1x2x128xf32>,
    return
  }
  func.func @transform_0(%arg0: i32, %arg1: i32, %arg2: memref<128xf32, #tpu.memory_space<smem>>, %arg3: memref<1xf32, #tpu.memory_space<smem>>) -> (i32, i32, i32, i32) {
    %c0_i32 = arith.constant 0 : i32
    %c0_i32_0 = arith.constant 0 : i32
    %c0_i32_1 = arith.constant 0 : i32
    return %arg0, %c0_i32, %arg1, %c0_i32_0 : i32, i32, i32, i32
  }
  func.func @transform_1(%arg0: i32, %arg1: i32, %arg2: memref<128xf32, #tpu.memory_space<smem>>, %arg3: memref<1xf32, #tpu.memory_space<smem>>) -> (i32, i32, i32, i32) {
    %c0_i32 = arith.constant 0 : i32
    %c0_i32_0 = arith.constant 0 : i32
    %c0_i32_1 = arith.constant 0 : i32
    return %arg0, %c0_i32, %arg1, %c0_i32_0 : i32, i32, i32, i32
  }
  func.func @transform_2(%arg0: i32, %arg1: i32, %arg2: memref<128xf32, #tpu.memory_space<smem>>, %arg3: memref<1xf32, #tpu.memory_space<smem>>) -> (i32, i32, i32, i32) {
    %c0_i32 = arith.constant 0 : i32
    %c0_i32_0 = arith.constant 0 : i32
    %c0_i32_1 = arith.constant 0 : i32
    return %arg0, %c0_i32, %arg1, %c0_i32_0 : i32, i32, i32, i32
  }
  func.func @transform_3(%arg0: i32, %arg1: i32, %arg2: memref<128xf32, #tpu.memory_space<smem>>, %arg3: memref<1xf32, #tpu.memory_space<smem>>) -> (i32, i32, i32, i32) {
    %c0_i32 = arith.constant 0 : i32
    %c0_i32_0 = arith.constant 0 : i32
    %c0_i32_1 = arith.constant 0 : i32
    return %arg0, %c0_i32, %arg1, %c0_i32_0 : i32, i32, i32, i32
  }
  func.func @transform_4(%arg0: i32, %arg1: i32, %arg2: memref<128xf32, #tpu.memory_space<smem>>, %arg3: memref<1xf32, #tpu.memory_space<smem>>) -> (i32, i32, i32, i32) {
    %c0_i32 = arith.constant 0 : i32
    %c0_i32_0 = arith.constant 0 : i32
    %c0_i32_1 = arith.constant 0 : i32
    return %arg0, %c0_i32, %arg1, %c0_i32_0 : i32, i32, i32, i32
  }
}

</mosaic_0001>

<bundles_post_ra>
// kernel: tpu_custom_call.1
= control target key start
LH: loop header
LB: loop body
LE: loop exit
PB: predicated region body
PF: predicated region fallthrough
CT: control target
= control target key end

     0   :  { %s2637_s0 = inlined_call_operand.vmem [shape: f32[128], index: 0, kind: input, shape index: {}]   ;;  %s2638_s1 = inlined_call_operand.<no memory space> [shape: f32[1], index: 1, kind: input, shape index: {}]   ;;  %s2639_s2 = inlined_call_operand.hbm [shape: f32[2,32,2,128], index: 2, kind: input, shape index: {}]   ;;  %s2640_s3 = inlined_call_operand.hbm [shape: f32[2,32,2,128], index: 3, kind: input, shape index: {}]   ;;  %s2641_s4 = inlined_call_operand.hbm [shape: f32[2,32,2,128], index: 4, kind: input, shape index: {}]   ;;  %s2642_s5 = inlined_call_operand.hbm [shape: f32[2,32,2,128], index: 5, kind: input, shape index: {}]   ;;  %s2643_s6 = inlined_call_operand.hbm [shape: f32[2,1,2,128], index: 6, kind: output, shape index: {}]  }
   0x1   :  { %2650 = sst [smem:[#allocation24_spill]] %s2640_s3  ;;  %s11_s23 = sshll.u32 %s2637_s0, 4  ;;  %s12_s23 = int_to_ptr.vmem [resolvable:$true] %s11_s23 }
   0x2   :  { %15 = sst [smem:[#allocation4]] %s2638_s1  ;;  %s1673_s26 = scalar_lea.vmem %s12_s23, 16 }
   0x3   :  { %p1674_p0 = scmp.ne.s32.totalorder %s12_s23, %s1673_s26  ;;  %p1678_p1 = scmp.lt.s32.totalorder %s12_s23, %s12_s23 }
   0x4   :  { %p1679_p2 = scmp.lt.s32.totalorder %s1673_s26, %s1673_s26 }
   0x6   :  { %p1680_p3 = por %p1679_p2, %p1678_p1 }
   0x8   :  { %p1681_p4 = pnand %p1680_p3, %p1674_p0 }
   0xa   :  { %1684 = shalt.err (!%p1681_p4)  }
   0xb   :  { %s1889_s27 = smov [#allocation3]  }
   0xc   :  { %14 = dma.vmem_to_smem %s12_s23, 16, %s1889_s27, [#allocation2] }
   0xd   :  { %1847 = dma.done.wait [#allocation2], 16 }
   0xe   :  { %1848 = vsyncadd [#allocation2], 4294967280 }
   0xf   :  { %17 = sfence }
  0x10   :  { %18 = vsyncpa [#allocation6], 0 }
  0x11   :  { %20 = vsyncpa [#allocation6 + $0x1], 0 }
  0x12   :  { %21 = vsyncpa [#allocation9], 0 }
  0x13   :  { %23 = vsyncpa [#allocation9 + $0x1], 0 }
  0x14   :  { %24 = vsyncpa [#allocation12], 0 }
  0x15   :  { %26 = vsyncpa [#allocation12 + $0x1], 0 }
  0x16   :  { %27 = vsyncpa [#allocation7], 0 }
  0x17   :  { %29 = vsyncpa [#allocation7 + $0x1], 0  ;;  %s1938_s0 = smov 0   ;;  %s1940_s1 = smov 0  }
  0x18   :  { %s1942_s28 = smov 0   ;;  %s1944_s29 = smov 0  }
  0x19   :  { %s1946_s30 = smov 0   ;;  %s1948_s7 = smov 0  }
  0x1a LB: > { %2651 = sst [smem:[#allocation19_spill]] %s1875_s28  ;;  %s1969_s8 = sadd.s32 4294967295, %s1887_s7   ;;  %s1887_s7 = sphi %s1948_s7, %s35_s7   ;;  %s1883_s30 = sphi %s1946_s30, %s2669_s30   ;;  %s1879_s29 = sphi %s1944_s29, %s2668_s29   ;;  %s1875_s28 = sphi %s1942_s28, %s2667_s28   ;;  %s1871_s1 = sphi %s1940_s1, %s2671_s1   ;;  %s1867_s0 = sphi %s1938_s0, %s2670_s0  }
  0x1b   : > { %2652 = sst [smem:[#allocation20_spill]] %s1883_s30  ;;  %s1309_s9 = sadd.s32 4294967294, %s1887_s7  }
  0x1c   : > { %s47_s10 = sadd.s32 1, %s1883_s30  ;;  %s56_s11 = sadd.s32 1, %s1875_s28 }
  0x1d   : > { %p49_p5 = scmp.ge.s32.totalorder %s47_s10, 2  ;;  %p63_p6 = scmp.ne.s32.totalorder %s1875_s28, %s1871_s1 }
  0x1e   : > { %p64_p7 = scmp.eq.s32.totalorder %s1887_s7, 0  ;;  %p69_p8 = scmp.ne.s32.totalorder %s1871_s1, %s1867_s0 }
  0x1f   : > { %s2673_s10 = smov (%p49_p5, %s47_s10), 0  ;;  %p70_p10 = scmp.eq.s32.totalorder %s1969_s8, 0 }
  0x20   : > { %2653 = sst [smem:[#allocation21_spill]] %s2673_s10  ;;  %p1981_p9 = por %p64_p7, %p63_p6 }
  0x21   : > { %s51_s13 = ssub.s32 %s1883_s30, %s2673_s10  ;;  %p179_p11 = scmp.eq.s32.totalorder %s1969_s8, 1 }
  0x22   : > { %p54_p12 = scmp.eq.s32.totalorder %s51_s13, 0  ;;  %p1989_p13 = por %p70_p10, %p69_p8 }
  0x23   : > { %p1993_p0 = por %p179_p11, %p63_p6  ;;  %p185_p1 = scmp.eq.s32.totalorder %s1309_s9, 1 }
  0x24   : > { %s1998_s16 = scalar_select %p54_p12, %s1875_s28, %s56_s11  }
  0x25   : > { %p2000_p2 = por %p185_p1, %p69_p8  ;;  %p1616_p4 = scmp.lt.s32.totalorder %s1887_s7, 2 }
  0x26   : > { %2657 = sst [smem:[#allocation22_spill]] %s1998_s16  ;;  %s2007_s18 = sand.u32 1, %s1875_s28  }
  0x27   : > { %s2658_s17 = scalar_select %p2000_p2, 1, 0 }
  0x28   : > { %s2010_s19 = sshll.u32 %s2007_s18, 6  ;;  %s2013_s20 = sshll.u32 %s1883_s30, 10 }
  0x29   : > { %2659 = sst [smem:[#allocation23_spill]] %s2658_s17  ;;  %p2017_p5 = pnand %p1616_p4, %p1981_p9 }
  0x2a   : > { %s227_s22 = sand.u32 1, %s1887_s7   ;;  %s2661_s3 = sld [smem:[#allocation24_spill]] }
  0x2b   : > { %s231_s26 = scalar_lea.vmem [#allocation8], %s2010_s19  ;;  %p1324_p6 = scmp.ge.s32.totalorder %s1887_s7, 1 }
  0x2c   : > { %s239_s27 = sshll.u32 %s231_s26, 4  ;;  %p291_p7 = scmp.lt.s32.totalorder %s1887_s7, 3  ;;  %s240_s27 = int_to_ptr.vmem [resolvable:$true] %s239_s27 }
  0x2d   : > { %s2029_s9 = scalar_lea.sflag [#allocation9], %s227_s22  ;;  %p1687_p8 = pneg %p2017_p5 }
  0x2e   : > { %s1698_s11 = scalar_lea.vmem %s240_s27, 1024  ;;  %s1890_s12 = smov [#allocation8]  }
  0x2f   : > { %p1699_p9 = scmp.ne.s32.totalorder %s240_s27, %s1698_s11  ;;  %s1703_s13 = sshll.u32 %s1890_s12, 4  ;;  %s1704_s13 = int_to_ptr.vmem [resolvable:$false] %s1703_s13 }
  0x30   : > { %s238_s25 = scalar_lea.hbm %s2661_s3, %s2013_s20  ;;  %s1705_s23 = scalar_lea.vmem %s1704_s13, 2048 }
  0x31   : > { %p1701_p10 = pnand %p1699_p9, %p1687_p8  ;;  %p1706_p12 = scmp.lt.s32.totalorder %s240_s27, %s1704_s13 }
  0x32   : > { %p1707_p1 = scmp.lt.s32.totalorder %s1705_s23, %s1698_s11 }
  0x33   : > { %p1702_p11 = pneg %p1701_p10 }
  0x34   : > { %p1708_p4 = por %p1707_p1, %p1706_p12 }
  0x36   : > { %p1709_p3 = pnand %p1708_p4, %p1702_p11 }
  0x38   : > { %1712 = shalt.err (!%p1709_p3)
}
  0x39   : > { %s2648_s24 = smov 32   ;;  %s1892_s22 = smov 2  }
  0x3a   : > { %1605 = dma.hbm_to_vmem [thread:$0]  (!%p2017_p5), %s238_s25, 1024, %s240_s27, %s2029_s9, %s2648_s24, %s2648_s24, %s1892_s22  }
  0x3b   : > { %p2046_p9 = pnand %p1324_p6, %p291_p7  ;;  %s216_s13 = scalar_lea.hbm %s2639_s2, %s2013_s20 }
  0x3c   : > { %s209_s23 = scalar_lea.vmem [#allocation5], %s2010_s19  ;;  %s260_s16 = scalar_lea.hbm %s2641_s4, %s2013_s20 }
  0x3d   : > { %s217_s3 = sshll.u32 %s209_s23, 4  ;;  %s206_s28 = scalar_lea.sflag [#allocation6], %s2007_s18  ;;  %s218_s3 = int_to_ptr.vmem [resolvable:$true] %s217_s3 }
  0x3e   : > { %s1726_s17 = scalar_lea.vmem %s218_s3, 1024  ;;  %s1893_s25 = smov [#allocation5]  }
  0x3f   : > { %p1727_p3 = scmp.ne.s32.totalorder %s218_s3, %s1726_s17  ;;  %s1731_s27 = sshll.u32 %s1893_s25, 4  ;;  %s1732_s27 = int_to_ptr.vmem [resolvable:$false] %s1731_s27 }
  0x40   : > { %s1733_s24 = scalar_lea.vmem %s1732_s27, 2048  ;;  %p1734_p10 = scmp.lt.s32.totalorder %s218_s3, %s1732_s27 }
  0x41   : > { %p1729_p6 = pnand %p1727_p3, %p1687_p8  ;;  %p1735_p11 = scmp.lt.s32.totalorder %s1733_s24, %s1726_s17 }
  0x43   : > { %p1730_p7 = pneg %p1729_p6  ;;  %p1736_p12 = por %p1735_p11, %p1734_p10 }
  0x45   : > { %p1737_p1 = pnand %p1736_p12, %p1730_p7 }
  0x47   : > { %1740 = shalt.err (!%p1737_p1)
}
  0x48   : > { %s2663_s30 = smov 32   ;;  %s253_s10 = scalar_lea.vmem [#allocation10], %s2010_s19 }
  0x49   : > { %1602 = dma.hbm_to_vmem [thread:$0]  (!%p2017_p5), %s216_s13, 1024, %s218_s3, %s206_s28, %s2663_s30, %s2663_s30, %s1892_s22  }
  0x4a   : > { %s261_s11 = sshll.u32 %s253_s10, 4  ;;  %s1894_s17 = smov [#allocation10]   ;;  %s262_s11 = int_to_ptr.vmem [resolvable:$true] %s261_s11 }
  0x4b   : > { %s1754_s12 = scalar_lea.vmem %s262_s11, 1024  ;;  %s1759_s24 = sshll.u32 %s1894_s17, 4  ;;  %s1760_s24 = int_to_ptr.vmem [resolvable:$false] %s1759_s24 }
  0x4c   : > { %p1755_p4 = scmp.ne.s32.totalorder %s262_s11, %s1754_s12  ;;  %s1761_s23 = scalar_lea.vmem %s1760_s24, 2048 }
  0x4d   : > { %p1762_p7 = scmp.lt.s32.totalorder %s262_s11, %s1760_s24  ;;  %p1763_p10 = scmp.lt.s32.totalorder %s1761_s23, %s1754_s12 }
  0x4e   : > { %p1757_p3 = pnand %p1755_p4, %p1687_p8 }
  0x4f   : > { %p1764_p11 = por %p1763_p10, %p1762_p7 }
  0x50   : > { %p1758_p6 = pneg %p1757_p3 }
  0x52   : > { %p1765_p12 = pnand %p1764_p11, %p1758_p6 }
  0x54   : > { %1768 = shalt.err (!%p1765_p12)
}
  0x55   : > { %1608 = dma.hbm_to_vmem [thread:$0]  (!%p2017_p5), %s260_s16, 1024, %s262_s11, %s2029_s9, %s2663_s30, %s2663_s30, %s1892_s22  }
  0x56   : > { %s282_s27 = scalar_lea.hbm %s2642_s5, %s2013_s20  ;;  %s275_s10 = scalar_lea.vmem [#allocation11], %s2010_s19 }
  0x57   : > { %s283_s12 = sshll.u32 %s275_s10, 4  ;;  %s272_s17 = scalar_lea.sflag [#allocation12], %s2007_s18  ;;  %s284_s12 = int_to_ptr.vmem [resolvable:$true] %s283_s12 }
  0x58   : > { %s1782_s24 = scalar_lea.vmem %s284_s12, 1024  ;;  %s1895_s23 = smov [#allocation11]  }
  0x59   : > { %p1783_p1 = scmp.ne.s32.totalorder %s284_s12, %s1782_s24  ;;  %s1787_s3 = sshll.u32 %s1895_s23, 4  ;;  %s1788_s3 = int_to_ptr.vmem [resolvable:$false] %s1787_s3 }
  0x5a   : > { %s1789_s28 = scalar_lea.vmem %s1788_s3, 2048  ;;  %p1790_p6 = scmp.lt.s32.totalorder %s284_s12, %s1788_s3 }
  0x5b   : > { %p1785_p4 = pnand %p1783_p1, %p1687_p8  ;;  %p1791_p7 = scmp.lt.s32.totalorder %s1789_s28, %s1782_s24 }
  0x5d   : > { %p1786_p3 = pneg %p1785_p4  ;;  %p1792_p10 = por %p1791_p7, %p1790_p6 }
  0x5f   : > { %p1793_p11 = pnand %p1792_p10, %p1786_p3 }
  0x61   : > { %1796 = shalt.err (!%p1793_p11)
}
  0x62   : > { %1611 = dma.hbm_to_vmem [thread:$0]  (!%p2017_p5), %s282_s27, 1024, %s284_s12, %s272_s17, %s2663_s30, %s2663_s30, %s1892_s22  }
  0x63   : > { %295 = sbr.rel (%p2046_p9) target bundleno = 302 (0x12e), region = 36  ;;  %s2100_s16 = sand.u32 (!%p2046_p9), 1, %s1871_s1  }
  0x64   : > { %s1325_s18 = sshll.u32 (!%p2046_p9), %s2100_s16, 6  ;;  %s298_s19 = scalar_lea.sflag (!%p2046_p9), [#allocation6], %s2100_s16 }
  0x65   : > { %s2104_s20 = scalar_lea.vmem (!%p2046_p9), [#allocation5], %s1325_s18 }
  0x68   : > { %1850 = dma.done.wait (%p1989_p13), %s298_s19, 1024  }
  0x69   : > { %1852 = vsyncadd (%p1989_p13), %s298_s19, 4294966272  ;;  %s306_s21 = sand.u32 1, %s1969_s8   ;;  %s2111_s22 = scalar_lea.vmem [#allocation8], %s1325_s18 }
  0x6a   : > { %s307_s9 = scalar_lea.sflag [#allocation9], %s306_s21 }
  0x6b   : > { %1854 = dma.done.wait (%p1989_p13), %s307_s9, 2048  }
  0x6c   : > { %1856 = vsyncadd (%p1989_p13), %s307_s9, 4294965248  ;;  %s2117_s26 = scalar_lea.vmem [#allocation10], %s1325_s18  ;;  %s325_s30 = scalar_lea.sflag [#allocation12], %s2100_s16 }
  0x6d   : > { %s2120_s11 = scalar_lea.vmem [#allocation11], %s1325_s18 }
  0x6e   : > { %1858 = dma.done.wait (%p1989_p13), %s325_s30, 1024  }
  0x6f   : > { %1860 = vsyncadd (%p1989_p13), %s325_s30, 4294966272  ;;  %s369_s8 = sld [smem:[#allocation3]]  ;;  %v368_v0 = vld [vmem:[%s2104_s20] sm:$0x3]  ;;  %v1336_v2 = vld [vmem:[%s2104_s20 + $0x8] sm:$0x3] }
  0x70   : > { %s1331_s13 = sld [smem:[#allocation3 + $0x1]]  ;;  %v1330_v3 = vld [vmem:[%s2104_s20 + $0x2] sm:$0x3]  ;;  %v1338_v5 = vld [vmem:[%s2104_s20 + $0xa] sm:$0x3] }
  0x71   : > { %s1333_s25 = sld [smem:[#allocation3 + $0x2]]  ;;  %v1332_v6 = vld [vmem:[%s2104_s20 + $0x4] sm:$0x3]  ;;  %v1334_v10 = vld [vmem:[%s2104_s20 + $0x6] sm:$0x3] }
  0x72   : > { %s1335_s27 = sld [smem:[#allocation3 + $0x3]]  ;;  %v1340_v16 = vld [vmem:[%s2104_s20 + $0xc] sm:$0x3]  ;;  %v1342_v18 = vld [vmem:[%s2104_s20 + $0xe] sm:$0x3] }
  0x73   : > { %s1337_s10 = sld [smem:[#allocation3 + $0x4]]  ;;  %v1344_v21 = vld [vmem:[%s2104_s20 + $0x10] sm:$0x3]  ;;  %v1346_v25 = vld [vmem:[%s2104_s20 + $0x12] sm:$0x3] }
  0x74   : > { %s1339_s12 = sld [smem:[#allocation3 + $0x5]]  ;;  %v1348_v29 = vld [vmem:[%s2104_s20 + $0x14] sm:$0x3]  ;;  %v1350_v33 = vld [vmem:[%s2104_s20 + $0x16] sm:$0x3] }
  0x75   : > { %v370_v1 = vstv %s369_s8  ;;  %s1341_s17 = sld [smem:[#allocation3 + $0x6]]  ;;  %v1352_v37 = vld [vmem:[%s2104_s20 + $0x18] sm:$0x3]  ;;  %v1354_v41 = vld [vmem:[%s2104_s20 + $0x1a] sm:$0x3] }
  0x76   : > { %v375_v4 = vstv %s1331_s13  ;;  %s1343_s14 = sld [smem:[#allocation3 + $0x7]]  ;;  %v371_v9 = vmul.f32 %v370_v1, %v368_v0  ;;  %v1356_v45 = vld [vmem:[%s2104_s20 + $0x1c] sm:$0x3]  ;;  %v1358_v49 = vld [vmem:[%s2104_s20 + $0x1e] sm:$0x3] }
  0x77   : > { %v380_v7 = vstv %s1333_s25  ;;  %s1345_s24 = sld [smem:[#allocation3 + $0x8]]  ;;  %v376_v14 = vmul.f32 %v1330_v3, %v375_v4  ;;  %v1360_v53 = vld [vmem:[%s2104_s20 + $0x20] sm:$0x3]  ;;  %v1362_v57 = vld [vmem:[%s2104_s20 + $0x22] sm:$0x3] }
  0x78   : > { %v385_v11 = vstv %s1335_s27  ;;  %s1347_s23 = sld [smem:[#allocation3 + $0x9]]  ;;  %v381_v17 = vmul.f32 %v1332_v6, %v380_v7  ;;  %v1364_v61 = vld [vmem:[%s2104_s20 + $0x24] sm:$0x3]  ;;  %v1366_v1 = vld [vmem:[%s2104_s20 + $0x26] sm:$0x3] }
  0x79   : > { %v390_v8 = vstv %s1337_s10  ;;  %s1349_s3 = sld [smem:[#allocation3 + $0xa]]  ;;  %v386_v19 = vmul.f32 %v1334_v10, %v385_v11 }
  0x7a   : > { %v391_v12 = vmul.f32 %v1336_v2, %v390_v8  ;;  %v396_v13 = vstv %s1339_s12  ;;  %s2134_s28 = sld [smem:[#allocation3 + $0xb]] }
  0x7b   : > { %v397_v15 = vmul.f32 %v1338_v5, %v396_v13  ;;  %v402_v20 = vstv %s1341_s17  ;;  %s2137_s18 = sld [smem:[#allocation3 + $0xc]]  ;;  %v1368_v5 = vld [vmem:[%s2104_s20 + $0x28] sm:$0x3]  ;;  %v1372_v13 = vld [vmem:[%s2104_s20 + $0x2c] sm:$0x3] }
  0x7c   : > { %v392_v22 = vadd.f32 %v391_v12, %v371_v9  ;;  %v403_v23 = vmul.f32 %v1340_v16, %v402_v20  ;;  %v408_v24 = vstv %s1343_s14  ;;  %s2140_s19 = sld [smem:[#allocation3 + $0xd]]  ;;  %v1370_v9 = vld [vmem:[%s2104_s20 + $0x2a] sm:$0x3] }
  0x7d   : > { %v398_v26 = vadd.f32 %v397_v15, %v376_v14  ;;  %v409_v27 = vmul.f32 %v1342_v18, %v408_v24  ;;  %v414_v28 = vstv %s1345_s24  ;;  %s2143_s21 = sld [smem:[#allocation3 + $0xe]] }
  0x7e   : > { %v404_v30 = vadd.f32 %v403_v23, %v381_v17  ;;  %v415_v31 = vmul.f32 %v1344_v21, %v414_v28  ;;  %v420_v32 = vstv %s1347_s23  ;;  %s2146_s9 = sld [smem:[#allocation3 + $0xf]]  ;;  %v1374_v17 = vld [vmem:[%s2104_s20 + $0x2e] sm:$0x3]  ;;  %v1376_v21 = vld [vmem:[%s2104_s20 + $0x30] sm:$0x3] }
  0x7f   : > { %v410_v34 = vadd.f32 %v409_v27, %v386_v19  ;;  %v421_v35 = vmul.f32 %v1346_v25, %v420_v32  ;;  %v426_v36 = vstv %s1349_s3  ;;  %s2149_s30 = sld [smem:[#allocation3 + $0x10]]  ;;  %v1378_v25 = vld [vmem:[%s2104_s20 + $0x32] sm:$0x3] }
  0x80   : > { %v416_v38 = vadd.f32 %v415_v31, %v392_v22  ;;  %v427_v39 = vmul.f32 %v1348_v29, %v426_v36  ;;  %v432_v40 = vstv %s2134_s28  ;;  %s2153_s8 = sld [smem:[#allocation3 + $0x11]]  ;;  %v1380_v29 = vld [vmem:[%s2104_s20 + $0x34] sm:$0x3] }
  0x81   : > { %v422_v42 = vadd.f32 %v421_v35, %v398_v26  ;;  %v433_v43 = vmul.f32 %v1350_v33, %v432_v40  ;;  %v438_v44 = vstv %s2137_s18  ;;  %s2157_s13 = sld [smem:[#allocation3 + $0x12]]  ;;  %v1382_v33 = vld [vmem:[%s2104_s20 + $0x36] sm:$0x3] }
  0x82   : > { %v428_v46 = vadd.f32 %v427_v39, %v404_v30  ;;  %v439_v47 = vmul.f32 %v1352_v37, %v438_v44  ;;  %v444_v48 = vstv %s2140_s19  ;;  %s2161_s25 = sld [smem:[#allocation3 + $0x13]]  ;;  %v1384_v37 = vld [vmem:[%s2104_s20 + $0x38] sm:$0x3] }
  0x83   : > { %v434_v50 = vadd.f32 %v433_v43, %v410_v34  ;;  %v445_v51 = vmul.f32 %v1354_v41, %v444_v48  ;;  %v450_v52 = vstv %s2143_s21  ;;  %s2165_s27 = sld [smem:[#allocation3 + $0x14]]  ;;  %v1386_v41 = vld [vmem:[%s2104_s20 + $0x3a] sm:$0x3] }
  0x84   : > { %v440_v54 = vadd.f32 %v439_v47, %v416_v38  ;;  %v451_v55 = vmul.f32 %v1356_v45, %v450_v52  ;;  %v456_v56 = vstv %s2146_s9  ;;  %s2169_s10 = sld [smem:[#allocation3 + $0x15]]  ;;  %v1388_v45 = vld [vmem:[%s2104_s20 + $0x3c] sm:$0x3] }
  0x85   : > { %v446_v58 = vadd.f32 %v445_v51, %v422_v42  ;;  %v457_v59 = vmul.f32 %v1358_v49, %v456_v56  ;;  %v462_v60 = vstv %s2149_s30  ;;  %s2173_s12 = sld [smem:[#allocation3 + $0x16]]  ;;  %v1390_v49 = vld [vmem:[%s2104_s20 + $0x3e] sm:$0x3] }
  0x86   : > { %v452_v62 = vadd.f32 %v451_v55, %v428_v46  ;;  %v463_v63 = vmul.f32 %v1360_v53, %v462_v60  ;;  %v468_v0 = vstv %s2153_s8  ;;  %s2177_s17 = sld [smem:[#allocation3 + $0x17]]  ;;  %v555_v53 = vld [vmem:[%s2111_s22] sm:$0x3] }
  0x87   : > { %v458_v2 = vadd.f32 %v457_v59, %v434_v50  ;;  %v469_v3 = vmul.f32 %v1362_v57, %v468_v0  ;;  %v474_v4 = vstv %s2157_s13  ;;  %s2181_s14 = sld [smem:[#allocation3 + $0x18]]  ;;  %v1393_v57 = vld [vmem:[%s2111_s22 + $0x2] sm:$0x3] }
  0x88   : > { %v464_v6 = vadd.f32 %v463_v63, %v440_v54  ;;  %v475_v7 = vmul.f32 %v1364_v61, %v474_v4  ;;  %v480_v8 = vstv %s2161_s25  ;;  %s2185_s24 = sld [smem:[#allocation3 + $0x19]]  ;;  %v1395_v61 = vld [vmem:[%s2111_s22 + $0x4] sm:$0x3] }
  0x89   : > { %v470_v10 = vadd.f32 %v469_v3, %v446_v58  ;;  %v481_v11 = vmul.f32 %v1366_v1, %v480_v8  ;;  %v486_v12 = vstv %s2165_s27  ;;  %s2189_s23 = sld [smem:[#allocation3 + $0x1a]]  ;;  %v1397_v1 = vld [vmem:[%s2111_s22 + $0x6] sm:$0x3] }
  0x8a   : > { %v476_v14 = vadd.f32 %v475_v7, %v452_v62  ;;  %v487_v15 = vmul.f32 %v1368_v5, %v486_v12  ;;  %v492_v16 = vstv %s2169_s10  ;;  %s2193_s3 = sld [smem:[#allocation3 + $0x1b]]  ;;  %v1399_v5 = vld [vmem:[%s2111_s22 + $0x8] sm:$0x3] }
  0x8b   : > { %v482_v18 = vadd.f32 %v481_v11, %v458_v2  ;;  %v493_v19 = vmul.f32 %v1370_v9, %v492_v16  ;;  %v498_v20 = vstv %s2173_s12  ;;  %s2197_s28 = sld [smem:[#allocation3 + $0x1c]]  ;;  %v1401_v9 = vld [vmem:[%s2111_s22 + $0xa] sm:$0x3] }
  0x8c   : > { %v488_v22 = vadd.f32 %v487_v15, %v464_v6  ;;  %v499_v23 = vmul.f32 %v1372_v13, %v498_v20  ;;  %v504_v24 = vstv %s2177_s17  ;;  %s2201_s18 = sld [smem:[#allocation3 + $0x1d]]  ;;  %v1403_v13 = vld [vmem:[%s2111_s22 + $0xc] sm:$0x3] }
  0x8d   : > { %v494_v26 = vadd.f32 %v493_v19, %v470_v10  ;;  %v505_v27 = vmul.f32 %v1374_v17, %v504_v24  ;;  %v510_v28 = vstv %s2181_s14  ;;  %s2205_s19 = sld [smem:[#allocation3 + $0x1e]]  ;;  %v1405_v17 = vld [vmem:[%s2111_s22 + $0xe] sm:$0x3] }
  0x8e   : > { %v500_v30 = vadd.f32 %v499_v23, %v476_v14  ;;  %v511_v31 = vmul.f32 %v1376_v21, %v510_v28  ;;  %v516_v32 = vstv %s2185_s24  ;;  %s2209_s21 = sld [smem:[#allocation3 + $0x1f]]  ;;  %v1407_v21 = vld [vmem:[%s2111_s22 + $0x10] sm:$0x3] }
  0x8f   : > { %v506_v34 = vadd.f32 %v505_v27, %v482_v18  ;;  %v517_v35 = vmul.f32 %v1378_v25, %v516_v32  ;;  %v522_v36 = vstv %s2189_s23  ;;  %s2213_s9 = sld [smem:[#allocation3 + $0x20]]  ;;  %v1409_v25 = vld [vmem:[%s2111_s22 + $0x12] sm:$0x3] }
  0x90   : > { %v512_v38 = vadd.f32 %v511_v31, %v488_v22  ;;  %v523_v39 = vmul.f32 %v1380_v29, %v522_v36  ;;  %v528_v40 = vstv %s2193_s3  ;;  %s2217_s30 = sld [smem:[#allocation3 + $0x21]]  ;;  %v1411_v29 = vld [vmem:[%s2111_s22 + $0x14] sm:$0x3] }
  0x91   : > { %v518_v42 = vadd.f32 %v517_v35, %v494_v26  ;;  %v529_v43 = vmul.f32 %v1382_v33, %v528_v40  ;;  %v534_v44 = vstv %s2197_s28  ;;  %s2221_s8 = sld [smem:[#allocation3 + $0x22]]  ;;  %v1413_v33 = vld [vmem:[%s2111_s22 + $0x16] sm:$0x3] }
  0x92   : > { %v524_v46 = vadd.f32 %v523_v39, %v500_v30  ;;  %v535_v47 = vmul.f32 %v1384_v37, %v534_v44  ;;  %v540_v48 = vstv %s2201_s18  ;;  %s2225_s13 = sld [smem:[#allocation3 + $0x23]]  ;;  %v1415_v37 = vld [vmem:[%s2111_s22 + $0x18] sm:$0x3] }
  0x93   : > { %v530_v50 = vadd.f32 %v529_v43, %v506_v34  ;;  %v541_v51 = vmul.f32 %v1386_v41, %v540_v48  ;;  %v546_v52 = vstv %s2205_s19  ;;  %s2229_s25 = sld [smem:[#allocation3 + $0x24]]  ;;  %v1417_v41 = vld [vmem:[%s2111_s22 + $0x1a] sm:$0x3] }
  0x94   : > { %v536_v54 = vadd.f32 %v535_v47, %v512_v38  ;;  %v547_v55 = vmul.f32 %v1388_v45, %v546_v52  ;;  %v552_v56 = vstv %s2209_s21  ;;  %s2233_s27 = sld [smem:[#allocation3 + $0x25]]  ;;  %v1419_v45 = vld [vmem:[%s2111_s22 + $0x1c] sm:$0x3] }
  0x95   : > { %v542_v58 = vadd.f32 %v541_v51, %v518_v42  ;;  %v553_v59 = vmul.f32 %v1390_v49, %v552_v56  ;;  %v557_v60 = vstv %s2213_s9  ;;  %s2237_s20 = sld [smem:[#allocation3 + $0x26]]  ;;  %v1421_v49 = vld [vmem:[%s2111_s22 + $0x1e] sm:$0x3] }
  0x96   : > { %v548_v62 = vadd.f32 %v547_v55, %v524_v46  ;;  %v558_v63 = vmul.f32 %v557_v60, %v555_v53  ;;  %v563_v0 = vstv %s2217_s30  ;;  %s2241_s10 = sld [smem:[#allocation3 + $0x27]]  ;;  %v1423_v53 = vld [vmem:[%s2111_s22 + $0x20] sm:$0x3] }
  0x97   : > { %v554_v2 = vadd.f32 %v553_v59, %v530_v50  ;;  %v564_v3 = vmul.f32 %v1393_v57, %v563_v0  ;;  %v569_v4 = vstv %s2221_s8  ;;  %s2245_s12 = sld [smem:[#allocation3 + $0x28]]  ;;  %v1425_v57 = vld [vmem:[%s2111_s22 + $0x22] sm:$0x3] }
  0x98   : > { %v559_v6 = vadd.f32 %v558_v63, %v536_v54  ;;  %v570_v7 = vmul.f32 %v1395_v61, %v569_v4  ;;  %v575_v8 = vstv %s2225_s13  ;;  %s2249_s17 = sld [smem:[#allocation3 + $0x29]]  ;;  %v1427_v61 = vld [vmem:[%s2111_s22 + $0x24] sm:$0x3] }
  0x99   : > { %v565_v10 = vadd.f32 %v564_v3, %v542_v58  ;;  %v576_v11 = vmul.f32 %v1397_v1, %v575_v8  ;;  %v581_v12 = vstv %s2229_s25  ;;  %s2253_s14 = sld [smem:[#allocation3 + $0x2a]]  ;;  %v1429_v1 = vld [vmem:[%s2111_s22 + $0x26] sm:$0x3] }
  0x9a   : > { %v571_v14 = vadd.f32 %v570_v7, %v548_v62  ;;  %v582_v15 = vmul.f32 %v1399_v5, %v581_v12  ;;  %v587_v16 = vstv %s2233_s27  ;;  %s2257_s24 = sld [smem:[#allocation3 + $0x2b]]  ;;  %v1431_v5 = vld [vmem:[%s2111_s22 + $0x28] sm:$0x3] }
  0x9b   : > { %v577_v18 = vadd.f32 %v576_v11, %v554_v2  ;;  %v588_v19 = vmul.f32 %v1401_v9, %v587_v16  ;;  %v593_v20 = vstv %s2237_s20  ;;  %s2261_s23 = sld [smem:[#allocation3 + $0x2c]]  ;;  %v1433_v9 = vld [vmem:[%s2111_s22 + $0x2a] sm:$0x3] }
  0x9c   : > { %v583_v22 = vadd.f32 %v582_v15, %v559_v6  ;;  %v594_v23 = vmul.f32 %v1403_v13, %v593_v20  ;;  %v599_v24 = vstv %s2241_s10  ;;  %s2265_s3 = sld [smem:[#allocation3 + $0x2d]]  ;;  %v1435_v13 = vld [vmem:[%s2111_s22 + $0x2c] sm:$0x3] }
  0x9d   : > { %v589_v26 = vadd.f32 %v588_v19, %v565_v10  ;;  %v600_v27 = vmul.f32 %v1405_v17, %v599_v24  ;;  %v605_v28 = vstv %s2245_s12  ;;  %s2269_s28 = sld [smem:[#allocation3 + $0x2e]]  ;;  %v1437_v17 = vld [vmem:[%s2111_s22 + $0x2e] sm:$0x3] }
  0x9e   : > { %v595_v30 = vadd.f32 %v594_v23, %v571_v14  ;;  %v606_v31 = vmul.f32 %v1407_v21, %v605_v28  ;;  %v611_v32 = vstv %s2249_s17  ;;  %s2273_s18 = sld [smem:[#allocation3 + $0x2f]]  ;;  %v1439_v21 = vld [vmem:[%s2111_s22 + $0x30] sm:$0x3] }
  0x9f   : > { %v601_v34 = vadd.f32 %v600_v27, %v577_v18  ;;  %v612_v35 = vmul.f32 %v1409_v25, %v611_v32  ;;  %v617_v36 = vstv %s2253_s14  ;;  %s2277_s19 = sld [smem:[#allocation3 + $0x30]]  ;;  %v1441_v25 = vld [vmem:[%s2111_s22 + $0x32] sm:$0x3] }
  0xa0   : > { %v607_v38 = vadd.f32 %v606_v31, %v583_v22  ;;  %v618_v39 = vmul.f32 %v1411_v29, %v617_v36  ;;  %v623_v40 = vstv %s2257_s24  ;;  %s2281_s21 = sld [smem:[#allocation3 + $0x31]]  ;;  %v1443_v29 = vld [vmem:[%s2111_s22 + $0x34] sm:$0x3] }
  0xa1   : > { %v613_v42 = vadd.f32 %v612_v35, %v589_v26  ;;  %v624_v43 = vmul.f32 %v1413_v33, %v623_v40  ;;  %v629_v44 = vstv %s2261_s23  ;;  %s2285_s9 = sld [smem:[#allocation3 + $0x32]]  ;;  %v1445_v33 = vld [vmem:[%s2111_s22 + $0x36] sm:$0x3] }
  0xa2   : > { %v619_v46 = vadd.f32 %v618_v39, %v595_v30  ;;  %v630_v47 = vmul.f32 %v1415_v37, %v629_v44  ;;  %v635_v48 = vstv %s2265_s3  ;;  %s2289_s30 = sld [smem:[#allocation3 + $0x33]]  ;;  %v1447_v37 = vld [vmem:[%s2111_s22 + $0x38] sm:$0x3] }
  0xa3   : > { %v625_v50 = vadd.f32 %v624_v43, %v601_v34  ;;  %v636_v51 = vmul.f32 %v1417_v41, %v635_v48  ;;  %v641_v52 = vstv %s2269_s28  ;;  %s2293_s8 = sld [smem:[#allocation3 + $0x34]]  ;;  %v1449_v41 = vld [vmem:[%s2111_s22 + $0x3a] sm:$0x3] }
  0xa4   : > { %v631_v54 = vadd.f32 %v630_v47, %v607_v38  ;;  %v642_v55 = vmul.f32 %v1419_v45, %v641_v52  ;;  %v647_v56 = vstv %s2273_s18  ;;  %s2297_s13 = sld [smem:[#allocation3 + $0x35]]  ;;  %v1451_v45 = vld [vmem:[%s2111_s22 + $0x3c] sm:$0x3] }
  0xa5   : > { %v637_v58 = vadd.f32 %v636_v51, %v613_v42  ;;  %v648_v59 = vmul.f32 %v1421_v49, %v647_v56  ;;  %v653_v60 = vstv %s2277_s19  ;;  %s2301_s25 = sld [smem:[#allocation3 + $0x36]]  ;;  %v1453_v49 = vld [vmem:[%s2111_s22 + $0x3e] sm:$0x3] }
  0xa6   : > { %v643_v62 = vadd.f32 %v642_v55, %v619_v46  ;;  %v654_v63 = vmul.f32 %v1423_v53, %v653_v60  ;;  %v659_v0 = vstv %s2281_s21  ;;  %s2305_s27 = sld [smem:[#allocation3 + $0x37]]  ;;  %v746_v53 = vld [vmem:[%s2117_s26] sm:$0x3] }
  0xa7   : > { %v649_v2 = vadd.f32 %v648_v59, %v625_v50  ;;  %v660_v3 = vmul.f32 %v1425_v57, %v659_v0  ;;  %v665_v4 = vstv %s2285_s9  ;;  %s2309_s20 = sld [smem:[#allocation3 + $0x38]]  ;;  %v1456_v57 = vld [vmem:[%s2117_s26 + $0x2] sm:$0x3] }
  0xa8   : > { %v655_v6 = vadd.f32 %v654_v63, %v631_v54  ;;  %v666_v7 = vmul.f32 %v1427_v61, %v665_v4  ;;  %v671_v8 = vstv %s2289_s30  ;;  %s2313_s10 = sld [smem:[#allocation3 + $0x39]]  ;;  %v1458_v61 = vld [vmem:[%s2117_s26 + $0x4] sm:$0x3] }
  0xa9   : > { %v661_v10 = vadd.f32 %v660_v3, %v637_v58  ;;  %v672_v11 = vmul.f32 %v1429_v1, %v671_v8  ;;  %v677_v12 = vstv %s2293_s8  ;;  %s2317_s12 = sld [smem:[#allocation3 + $0x3a]]  ;;  %v1460_v1 = vld [vmem:[%s2117_s26 + $0x6] sm:$0x3] }
  0xaa   : > { %v667_v14 = vadd.f32 %v666_v7, %v643_v62  ;;  %v678_v15 = vmul.f32 %v1431_v5, %v677_v12  ;;  %v683_v16 = vstv %s2297_s13  ;;  %s2321_s17 = sld [smem:[#allocation3 + $0x3b]]  ;;  %v1462_v5 = vld [vmem:[%s2117_s26 + $0x8] sm:$0x3] }
  0xab   : > { %v673_v18 = vadd.f32 %v672_v11, %v649_v2  ;;  %v684_v19 = vmul.f32 %v1433_v9, %v683_v16  ;;  %v689_v20 = vstv %s2301_s25  ;;  %s2325_s14 = sld [smem:[#allocation3 + $0x3c]]  ;;  %v1464_v9 = vld [vmem:[%s2117_s26 + $0xa] sm:$0x3] }
  0xac   : > { %v679_v22 = vadd.f32 %v678_v15, %v655_v6  ;;  %v690_v23 = vmul.f32 %v1435_v13, %v689_v20  ;;  %v695_v24 = vstv %s2305_s27  ;;  %s2329_s24 = sld [smem:[#allocation3 + $0x3d]]  ;;  %v1466_v13 = vld [vmem:[%s2117_s26 + $0xc] sm:$0x3] }
  0xad   : > { %v685_v26 = vadd.f32 %v684_v19, %v661_v10  ;;  %v696_v27 = vmul.f32 %v1437_v17, %v695_v24  ;;  %v701_v28 = vstv %s2309_s20  ;;  %s2333_s23 = sld [smem:[#allocation3 + $0x3e]]  ;;  %v1468_v17 = vld [vmem:[%s2117_s26 + $0xe] sm:$0x3] }
  0xae   : > { %v691_v30 = vadd.f32 %v690_v23, %v667_v14  ;;  %v702_v31 = vmul.f32 %v1439_v21, %v701_v28  ;;  %v707_v32 = vstv %s2313_s10  ;;  %s2337_s3 = sld [smem:[#allocation3 + $0x3f]]  ;;  %v1470_v21 = vld [vmem:[%s2117_s26 + $0x10] sm:$0x3] }
  0xaf   : > { %v697_v34 = vadd.f32 %v696_v27, %v673_v18  ;;  %v708_v35 = vmul.f32 %v1441_v25, %v707_v32  ;;  %v713_v36 = vstv %s2317_s12  ;;  %s2341_s28 = sld [smem:[#allocation3 + $0x40]]  ;;  %v1472_v25 = vld [vmem:[%s2117_s26 + $0x12] sm:$0x3] }
  0xb0   : > { %v703_v38 = vadd.f32 %v702_v31, %v679_v22  ;;  %v714_v39 = vmul.f32 %v1443_v29, %v713_v36  ;;  %v719_v40 = vstv %s2321_s17  ;;  %s2345_s18 = sld [smem:[#allocation3 + $0x41]]  ;;  %v1474_v29 = vld [vmem:[%s2117_s26 + $0x14] sm:$0x3] }
  0xb1   : > { %v709_v42 = vadd.f32 %v708_v35, %v685_v26  ;;  %v720_v43 = vmul.f32 %v1445_v33, %v719_v40  ;;  %v725_v44 = vstv %s2325_s14  ;;  %s2349_s19 = sld [smem:[#allocation3 + $0x42]]  ;;  %v1476_v33 = vld [vmem:[%s2117_s26 + $0x16] sm:$0x3] }
  0xb2   : > { %v715_v46 = vadd.f32 %v714_v39, %v691_v30  ;;  %v726_v47 = vmul.f32 %v1447_v37, %v725_v44  ;;  %v731_v48 = vstv %s2329_s24  ;;  %s2353_s21 = sld [smem:[#allocation3 + $0x43]]  ;;  %v1478_v37 = vld [vmem:[%s2117_s26 + $0x18] sm:$0x3] }
  0xb3   : > { %v721_v50 = vadd.f32 %v720_v43, %v697_v34  ;;  %v732_v51 = vmul.f32 %v1449_v41, %v731_v48  ;;  %v737_v52 = vstv %s2333_s23  ;;  %s2357_s9 = sld [smem:[#allocation3 + $0x44]]  ;;  %v1480_v41 = vld [vmem:[%s2117_s26 + $0x1a] sm:$0x3] }
  0xb4   : > { %v727_v54 = vadd.f32 %v726_v47, %v703_v38  ;;  %v738_v55 = vmul.f32 %v1451_v45, %v737_v52  ;;  %v743_v56 = vstv %s2337_s3  ;;  %s2361_s30 = sld [smem:[#allocation3 + $0x45]]  ;;  %v1482_v45 = vld [vmem:[%s2117_s26 + $0x1c] sm:$0x3] }
  0xb5   : > { %v733_v58 = vadd.f32 %v732_v51, %v709_v42  ;;  %v744_v59 = vmul.f32 %v1453_v49, %v743_v56  ;;  %v748_v60 = vstv %s2341_s28  ;;  %s2365_s22 = sld [smem:[#allocation3 + $0x46]]  ;;  %v1484_v49 = vld [vmem:[%s2117_s26 + $0x1e] sm:$0x3] }
  0xb6   : > { %v739_v62 = vadd.f32 %v738_v55, %v715_v46  ;;  %v749_v63 = vmul.f32 %v748_v60, %v746_v53  ;;  %v754_v0 = vstv %s2345_s18  ;;  %s2369_s8 = sld [smem:[#allocation3 + $0x47]]  ;;  %v1486_v53 = vld [vmem:[%s2117_s26 + $0x20] sm:$0x3] }
  0xb7   : > { %v745_v2 = vadd.f32 %v744_v59, %v721_v50  ;;  %v755_v3 = vmul.f32 %v1456_v57, %v754_v0  ;;  %v760_v4 = vstv %s2349_s19  ;;  %s2373_s13 = sld [smem:[#allocation3 + $0x48]]  ;;  %v1488_v57 = vld [vmem:[%s2117_s26 + $0x22] sm:$0x3] }
  0xb8   : > { %v750_v6 = vadd.f32 %v749_v63, %v727_v54  ;;  %v761_v7 = vmul.f32 %v1458_v61, %v760_v4  ;;  %v766_v8 = vstv %s2353_s21  ;;  %s2377_s25 = sld [smem:[#allocation3 + $0x49]]  ;;  %v1490_v61 = vld [vmem:[%s2117_s26 + $0x24] sm:$0x3] }
  0xb9   : > { %v756_v10 = vadd.f32 %v755_v3, %v733_v58  ;;  %v767_v11 = vmul.f32 %v1460_v1, %v766_v8  ;;  %v772_v12 = vstv %s2357_s9  ;;  %s2381_s27 = sld [smem:[#allocation3 + $0x4a]]  ;;  %v1492_v1 = vld [vmem:[%s2117_s26 + $0x26] sm:$0x3] }
  0xba   : > { %v762_v14 = vadd.f32 %v761_v7, %v739_v62  ;;  %v773_v15 = vmul.f32 %v1462_v5, %v772_v12  ;;  %v778_v16 = vstv %s2361_s30  ;;  %s2385_s20 = sld [smem:[#allocation3 + $0x4b]]  ;;  %v1494_v5 = vld [vmem:[%s2117_s26 + $0x28] sm:$0x3] }
  0xbb   : > { %v768_v18 = vadd.f32 %v767_v11, %v745_v2  ;;  %v779_v19 = vmul.f32 %v1464_v9, %v778_v16  ;;  %v784_v20 = vstv %s2365_s22  ;;  %s2389_s10 = sld [smem:[#allocation3 + $0x4c]]  ;;  %v1496_v9 = vld [vmem:[%s2117_s26 + $0x2a] sm:$0x3] }
  0xbc   : > { %v774_v22 = vadd.f32 %v773_v15, %v750_v6  ;;  %v785_v23 = vmul.f32 %v1466_v13, %v784_v20  ;;  %v790_v24 = vstv %s2369_s8  ;;  %s2393_s12 = sld [smem:[#allocation3 + $0x4d]]  ;;  %v1498_v13 = vld [vmem:[%s2117_s26 + $0x2c] sm:$0x3] }
  0xbd   : > { %v780_v26 = vadd.f32 %v779_v19, %v756_v10  ;;  %v791_v27 = vmul.f32 %v1468_v17, %v790_v24  ;;  %v796_v28 = vstv %s2373_s13  ;;  %s2397_s17 = sld [smem:[#allocation3 + $0x4e]]  ;;  %v1500_v17 = vld [vmem:[%s2117_s26 + $0x2e] sm:$0x3] }
  0xbe   : > { %v786_v30 = vadd.f32 %v785_v23, %v762_v14  ;;  %v797_v31 = vmul.f32 %v1470_v21, %v796_v28  ;;  %v802_v32 = vstv %s2377_s25  ;;  %s2401_s14 = sld [smem:[#allocation3 + $0x4f]]  ;;  %v1502_v21 = vld [vmem:[%s2117_s26 + $0x30] sm:$0x3] }
  0xbf   : > { %v792_v34 = vadd.f32 %v791_v27, %v768_v18  ;;  %v803_v35 = vmul.f32 %v1472_v25, %v802_v32  ;;  %v808_v36 = vstv %s2381_s27  ;;  %s2405_s24 = sld [smem:[#allocation3 + $0x50]]  ;;  %v1504_v25 = vld [vmem:[%s2117_s26 + $0x32] sm:$0x3] }
  0xc0   : > { %v798_v38 = vadd.f32 %v797_v31, %v774_v22  ;;  %v809_v39 = vmul.f32 %v1474_v29, %v808_v36  ;;  %v814_v40 = vstv %s2385_s20  ;;  %s2409_s23 = sld [smem:[#allocation3 + $0x51]]  ;;  %v1506_v29 = vld [vmem:[%s2117_s26 + $0x34] sm:$0x3] }
  0xc1   : > { %v804_v42 = vadd.f32 %v803_v35, %v780_v26  ;;  %v815_v43 = vmul.f32 %v1476_v33, %v814_v40  ;;  %v820_v44 = vstv %s2389_s10  ;;  %s2413_s3 = sld [smem:[#allocation3 + $0x52]]  ;;  %v1508_v33 = vld [vmem:[%s2117_s26 + $0x36] sm:$0x3] }
  0xc2   : > { %v810_v46 = vadd.f32 %v809_v39, %v786_v30  ;;  %v821_v47 = vmul.f32 %v1478_v37, %v820_v44  ;;  %v826_v48 = vstv %s2393_s12  ;;  %s2417_s28 = sld [smem:[#allocation3 + $0x53]]  ;;  %v1510_v37 = vld [vmem:[%s2117_s26 + $0x38] sm:$0x3] }
  0xc3   : > { %v816_v50 = vadd.f32 %v815_v43, %v792_v34  ;;  %v827_v51 = vmul.f32 %v1480_v41, %v826_v48  ;;  %v832_v52 = vstv %s2397_s17  ;;  %s2421_s18 = sld [smem:[#allocation3 + $0x54]]  ;;  %v1512_v41 = vld [vmem:[%s2117_s26 + $0x3a] sm:$0x3] }
  0xc4   : > { %v822_v54 = vadd.f32 %v821_v47, %v798_v38  ;;  %v833_v55 = vmul.f32 %v1482_v45, %v832_v52  ;;  %v838_v56 = vstv %s2401_s14  ;;  %s2425_s19 = sld [smem:[#allocation3 + $0x55]]  ;;  %v1514_v45 = vld [vmem:[%s2117_s26 + $0x3c] sm:$0x3] }
  0xc5   : > { %v828_v58 = vadd.f32 %v827_v51, %v804_v42  ;;  %v839_v59 = vmul.f32 %v1484_v49, %v838_v56  ;;  %v844_v60 = vstv %s2405_s24  ;;  %s2429_s21 = sld [smem:[#allocation3 + $0x56]]  ;;  %v1516_v49 = vld [vmem:[%s2117_s26 + $0x3e] sm:$0x3] }
  0xc6   : > { %v834_v62 = vadd.f32 %v833_v55, %v810_v46  ;;  %v845_v63 = vmul.f32 %v1486_v53, %v844_v60  ;;  %v850_v0 = vstv %s2409_s23  ;;  %s2433_s9 = sld [smem:[#allocation3 + $0x57]]  ;;  %v937_v53 = vld [vmem:[%s2120_s11] sm:$0x3] }
  0xc7   : > { %v840_v2 = vadd.f32 %v839_v59, %v816_v50  ;;  %v851_v3 = vmul.f32 %v1488_v57, %v850_v0  ;;  %v856_v4 = vstv %s2413_s3  ;;  %s2437_s30 = sld [smem:[#allocation3 + $0x58]]  ;;  %v1519_v57 = vld [vmem:[%s2120_s11 + $0x2] sm:$0x3] }
  0xc8   : > { %v846_v6 = vadd.f32 %v845_v63, %v822_v54  ;;  %v857_v7 = vmul.f32 %v1490_v61, %v856_v4  ;;  %v862_v8 = vstv %s2417_s28  ;;  %s2441_s22 = sld [smem:[#allocation3 + $0x59]]  ;;  %v1521_v61 = vld [vmem:[%s2120_s11 + $0x4] sm:$0x3] }
  0xc9   : > { %v852_v10 = vadd.f32 %v851_v3, %v828_v58  ;;  %v863_v11 = vmul.f32 %v1492_v1, %v862_v8  ;;  %v868_v12 = vstv %s2421_s18  ;;  %s2445_s8 = sld [smem:[#allocation3 + $0x5a]]  ;;  %v1523_v1 = vld [vmem:[%s2120_s11 + $0x6] sm:$0x3] }
  0xca   : > { %v858_v14 = vadd.f32 %v857_v7, %v834_v62  ;;  %v869_v15 = vmul.f32 %v1494_v5, %v868_v12  ;;  %v874_v16 = vstv %s2425_s19  ;;  %s2449_s13 = sld [smem:[#allocation3 + $0x5b]]  ;;  %v1525_v5 = vld [vmem:[%s2120_s11 + $0x8] sm:$0x3] }
  0xcb   : > { %v864_v18 = vadd.f32 %v863_v11, %v840_v2  ;;  %v875_v19 = vmul.f32 %v1496_v9, %v874_v16  ;;  %v880_v20 = vstv %s2429_s21  ;;  %s2453_s25 = sld [smem:[#allocation3 + $0x5c]]  ;;  %v1527_v9 = vld [vmem:[%s2120_s11 + $0xa] sm:$0x3] }
  0xcc   : > { %v870_v22 = vadd.f32 %v869_v15, %v846_v6  ;;  %v881_v23 = vmul.f32 %v1498_v13, %v880_v20  ;;  %v886_v24 = vstv %s2433_s9  ;;  %s2457_s27 = sld [smem:[#allocation3 + $0x5d]]  ;;  %v1529_v13 = vld [vmem:[%s2120_s11 + $0xc] sm:$0x3] }
  0xcd   : > { %v876_v26 = vadd.f32 %v875_v19, %v852_v10  ;;  %v887_v27 = vmul.f32 %v1500_v17, %v886_v24  ;;  %v892_v28 = vstv %s2437_s30  ;;  %s2461_s20 = sld [smem:[#allocation3 + $0x5e]]  ;;  %v1531_v17 = vld [vmem:[%s2120_s11 + $0xe] sm:$0x3] }
  0xce   : > { %v882_v30 = vadd.f32 %v881_v23, %v858_v14  ;;  %v893_v31 = vmul.f32 %v1502_v21, %v892_v28  ;;  %v898_v32 = vstv %s2441_s22  ;;  %s2465_s10 = sld [smem:[#allocation3 + $0x5f]]  ;;  %v1533_v21 = vld [vmem:[%s2120_s11 + $0x10] sm:$0x3] }
  0xcf   : > { %v888_v34 = vadd.f32 %v887_v27, %v864_v18  ;;  %v899_v35 = vmul.f32 %v1504_v25, %v898_v32  ;;  %v904_v36 = vstv %s2445_s8  ;;  %s2469_s12 = sld [smem:[#allocation3 + $0x60]]  ;;  %v1535_v25 = vld [vmem:[%s2120_s11 + $0x12] sm:$0x3] }
  0xd0   : > { %v894_v38 = vadd.f32 %v893_v31, %v870_v22  ;;  %v905_v39 = vmul.f32 %v1506_v29, %v904_v36  ;;  %v910_v40 = vstv %s2449_s13  ;;  %s2473_s17 = sld [smem:[#allocation3 + $0x61]]  ;;  %v1537_v29 = vld [vmem:[%s2120_s11 + $0x14] sm:$0x3] }
  0xd1   : > { %v900_v42 = vadd.f32 %v899_v35, %v876_v26  ;;  %v911_v43 = vmul.f32 %v1508_v33, %v910_v40  ;;  %v916_v44 = vstv %s2453_s25  ;;  %s2477_s14 = sld [smem:[#allocation3 + $0x62]]  ;;  %v1539_v33 = vld [vmem:[%s2120_s11 + $0x16] sm:$0x3] }
  0xd2   : > { %v906_v46 = vadd.f32 %v905_v39, %v882_v30  ;;  %v917_v47 = vmul.f32 %v1510_v37, %v916_v44  ;;  %v922_v48 = vstv %s2457_s27  ;;  %s2481_s24 = sld [smem:[#allocation3 + $0x63]]  ;;  %v1541_v37 = vld [vmem:[%s2120_s11 + $0x18] sm:$0x3] }
  0xd3   : > { %v912_v50 = vadd.f32 %v911_v43, %v888_v34  ;;  %v923_v51 = vmul.f32 %v1512_v41, %v922_v48  ;;  %v928_v52 = vstv %s2461_s20  ;;  %s2485_s23 = sld [smem:[#allocation3 + $0x64]]  ;;  %v1543_v41 = vld [vmem:[%s2120_s11 + $0x1a] sm:$0x3] }
  0xd4   : > { %v918_v54 = vadd.f32 %v917_v47, %v894_v38  ;;  %v929_v55 = vmul.f32 %v1514_v45, %v928_v52  ;;  %v934_v56 = vstv %s2465_s10  ;;  %s2489_s3 = sld [smem:[#allocation3 + $0x65]]  ;;  %v1545_v45 = vld [vmem:[%s2120_s11 + $0x1c] sm:$0x3] }
  0xd5   : > { %v924_v58 = vadd.f32 %v923_v51, %v900_v42  ;;  %v935_v59 = vmul.f32 %v1516_v49, %v934_v56  ;;  %v939_v60 = vstv %s2469_s12  ;;  %s2493_s26 = sld [smem:[#allocation3 + $0x66]]  ;;  %v1547_v49 = vld [vmem:[%s2120_s11 + $0x1e] sm:$0x3] }
  0xd6   : > { %v930_v62 = vadd.f32 %v929_v55, %v906_v46  ;;  %v940_v63 = vmul.f32 %v939_v60, %v937_v53  ;;  %v945_v0 = vstv %s2473_s17  ;;  %s2497_s28 = sld [smem:[#allocation3 + $0x67]]  ;;  %v1549_v53 = vld [vmem:[%s2120_s11 + $0x20] sm:$0x3] }
  0xd7   : > { %v936_v2 = vadd.f32 %v935_v59, %v912_v50  ;;  %v946_v3 = vmul.f32 %v1519_v57, %v945_v0  ;;  %v951_v4 = vstv %s2477_s14  ;;  %s2501_s18 = sld [smem:[#allocation3 + $0x68]]  ;;  %v1551_v57 = vld [vmem:[%s2120_s11 + $0x22] sm:$0x3] }
  0xd8   : > { %v941_v6 = vadd.f32 %v940_v63, %v918_v54  ;;  %v952_v7 = vmul.f32 %v1521_v61, %v951_v4  ;;  %v957_v8 = vstv %s2481_s24  ;;  %s2505_s19 = sld [smem:[#allocation3 + $0x69]]  ;;  %v1553_v61 = vld [vmem:[%s2120_s11 + $0x24] sm:$0x3] }
  0xd9   : > { %v947_v10 = vadd.f32 %v946_v3, %v924_v58  ;;  %v958_v11 = vmul.f32 %v1523_v1, %v957_v8  ;;  %v963_v12 = vstv %s2485_s23  ;;  %s2509_s21 = sld [smem:[#allocation3 + $0x6a]]  ;;  %v1555_v1 = vld [vmem:[%s2120_s11 + $0x26] sm:$0x3] }
  0xda   : > { %v953_v14 = vadd.f32 %v952_v7, %v930_v62  ;;  %v964_v15 = vmul.f32 %v1525_v5, %v963_v12  ;;  %v969_v16 = vstv %s2489_s3  ;;  %s2513_s9 = sld [smem:[#allocation3 + $0x6b]]  ;;  %v1557_v5 = vld [vmem:[%s2120_s11 + $0x28] sm:$0x3] }
  0xdb   : > { %v959_v18 = vadd.f32 %v958_v11, %v936_v2  ;;  %v970_v19 = vmul.f32 %v1527_v9, %v969_v16  ;;  %v975_v20 = vstv %s2493_s26  ;;  %s2517_s30 = sld [smem:[#allocation3 + $0x6c]]  ;;  %v1559_v9 = vld [vmem:[%s2120_s11 + $0x2a] sm:$0x3] }
  0xdc   : > { %v965_v22 = vadd.f32 %v964_v15, %v941_v6  ;;  %v976_v23 = vmul.f32 %v1529_v13, %v975_v20  ;;  %v981_v24 = vstv %s2497_s28  ;;  %s2521_s22 = sld [smem:[#allocation3 + $0x6d]]  ;;  %v1561_v13 = vld [vmem:[%s2120_s11 + $0x2c] sm:$0x3] }
  0xdd   : > { %v971_v26 = vadd.f32 %v970_v19, %v947_v10  ;;  %v982_v27 = vmul.f32 %v1531_v17, %v981_v24  ;;  %v987_v28 = vstv %s2501_s18  ;;  %s2525_s8 = sld [smem:[#allocation3 + $0x6e]]  ;;  %v1563_v17 = vld [vmem:[%s2120_s11 + $0x2e] sm:$0x3] }
  0xde   : > { %v977_v30 = vadd.f32 %v976_v23, %v953_v14  ;;  %v988_v31 = vmul.f32 %v1533_v21, %v987_v28  ;;  %v993_v32 = vstv %s2505_s19  ;;  %s2529_s13 = sld [smem:[#allocation3 + $0x6f]]  ;;  %v1565_v21 = vld [vmem:[%s2120_s11 + $0x30] sm:$0x3] }
  0xdf   : > { %v983_v34 = vadd.f32 %v982_v27, %v959_v18  ;;  %v994_v35 = vmul.f32 %v1535_v25, %v993_v32  ;;  %v999_v36 = vstv %s2509_s21  ;;  %s2533_s25 = sld [smem:[#allocation3 + $0x70]]  ;;  %v1567_v25 = vld [vmem:[%s2120_s11 + $0x32] sm:$0x3] }
  0xe0   : > { %v989_v38 = vadd.f32 %v988_v31, %v965_v22  ;;  %v1000_v39 = vmul.f32 %v1537_v29, %v999_v36  ;;  %v1005_v40 = vstv %s2513_s9  ;;  %s2537_s27 = sld [smem:[#allocation3 + $0x71]]  ;;  %v1569_v29 = vld [vmem:[%s2120_s11 + $0x34] sm:$0x3] }
  0xe1   : > { %v995_v42 = vadd.f32 %v994_v35, %v971_v26  ;;  %v1006_v43 = vmul.f32 %v1539_v33, %v1005_v40  ;;  %v1011_v44 = vstv %s2517_s30  ;;  %s2541_s20 = sld [smem:[#allocation3 + $0x72]]  ;;  %v1571_v33 = vld [vmem:[%s2120_s11 + $0x36] sm:$0x3] }
  0xe2   : > { %v1001_v46 = vadd.f32 %v1000_v39, %v977_v30  ;;  %v1012_v47 = vmul.f32 %v1541_v37, %v1011_v44  ;;  %v1017_v48 = vstv %s2521_s22  ;;  %s2545_s10 = sld [smem:[#allocation3 + $0x73]]  ;;  %v1573_v37 = vld [vmem:[%s2120_s11 + $0x38] sm:$0x3]  ;;  %s1582_s22 = sshll.u32 %s1879_s29, 5 }
  0xe3   : > { %v1007_v50 = vadd.f32 %v1006_v43, %v983_v34  ;;  %v1018_v51 = vmul.f32 %v1543_v41, %v1017_v48  ;;  %v1023_v52 = vstv %s2525_s8  ;;  %s2549_s12 = sld [smem:[#allocation3 + $0x74]]  ;;  %v1575_v41 = vld [vmem:[%s2120_s11 + $0x3a] sm:$0x3] }
  0xe4   : > { %v1013_v54 = vadd.f32 %v1012_v47, %v989_v38  ;;  %v1024_v55 = vmul.f32 %v1545_v45, %v1023_v52  ;;  %v1029_v56 = vstv %s2529_s13  ;;  %s2553_s17 = sld [smem:[#allocation3 + $0x75]]  ;;  %v1577_v45 = vld [vmem:[%s2120_s11 + $0x3c] sm:$0x3] }
  0xe5   : > { %v1019_v58 = vadd.f32 %v1018_v51, %v995_v42  ;;  %v1030_v59 = vmul.f32 %v1547_v49, %v1029_v56  ;;  %v1035_v60 = vstv %s2533_s25  ;;  %s2557_s14 = sld [smem:[#allocation3 + $0x76]]  ;;  %v1579_v49 = vld [vmem:[%s2120_s11 + $0x3e] sm:$0x3]  ;;  %s1329_s11 = sshll.u32 %s2100_s16, 1 }
  0xe6   : > { %v1025_v62 = vadd.f32 %v1024_v55, %v1001_v46  ;;  %v1036_v63 = vmul.f32 %v1549_v53, %v1035_v60  ;;  %v1041_v0 = vstv %s2537_s27  ;;  %s2561_s24 = sld [smem:[#allocation3 + $0x77]]  ;;  %s367_s8 = scalar_lea.vmem [#allocation13], %s1329_s11 }
  0xe7   : > { %v1031_v2 = vadd.f32 %v1030_v59, %v1007_v50  ;;  %v1042_v3 = vmul.f32 %v1551_v57, %v1041_v0  ;;  %v1047_v4 = vstv %s2541_s20  ;;  %s2565_s23 = sld [smem:[#allocation3 + $0x78]]  ;;  %s1155_s13 = sshll.u32 %s367_s8, 4  ;;  %s1156_s13 = int_to_ptr.vmem [resolvable:$true] %s1155_s13 }
  0xe8   : > { %v1037_v6 = vadd.f32 %v1036_v63, %v1013_v54  ;;  %v1048_v7 = vmul.f32 %v1553_v61, %v1047_v4  ;;  %v1053_v8 = vstv %s2545_s10  ;;  %s2569_s3 = sld [smem:[#allocation3 + $0x79]]  ;;  %s2595_s20 = scalar_lea.hbm %s2643_s6, %s1582_s22 }
  0xe9   : > { %v1043_v10 = vadd.f32 %v1042_v3, %v1019_v58  ;;  %v1054_v11 = vmul.f32 %v1555_v1, %v1053_v8  ;;  %v1059_v12 = vstv %s2549_s12  ;;  %s2573_s26 = sld [smem:[#allocation3 + $0x7a]]  ;;  %s1141_s10 = scalar_lea.sflag [#allocation7], %s2100_s16 }
  0xea   : > { %v1049_v14 = vadd.f32 %v1048_v7, %v1025_v62  ;;  %v1060_v15 = vmul.f32 %v1557_v5, %v1059_v12  ;;  %v1065_v16 = vstv %s2553_s17  ;;  %s1572_s28 = sld [smem:[#allocation3 + $0x7b]]  ;;  %s1797_s12 = scalar_lea.vmem %s1156_s13, 32 }
  0xeb   : > { %v1055_v18 = vadd.f32 %v1054_v11, %v1031_v2  ;;  %v1066_v19 = vmul.f32 %v1559_v9, %v1065_v16  ;;  %v1071_v20 = vstv %s2557_s14  ;;  %s1574_s18 = sld [smem:[#allocation3 + $0x7c]]  ;;  %p1798_p13 = scmp.ne.s32.totalorder %s1156_s13, %s1797_s12 }
  0xec   : > { %v1061_v22 = vadd.f32 %v1060_v15, %v1037_v6  ;;  %v1072_v23 = vmul.f32 %v1561_v13, %v1071_v20  ;;  %v1077_v24 = vstv %s2561_s24  ;;  %s1576_s19 = sld [smem:[#allocation3 + $0x7d]]  ;;  %s1896_s17 = smov [#allocation13]  }
  0xed   : > { %v1067_v26 = vadd.f32 %v1066_v19, %v1043_v10  ;;  %v1078_v27 = vmul.f32 %v1563_v17, %v1077_v24  ;;  %v1083_v28 = vstv %s2565_s23  ;;  %s1578_s21 = sld [smem:[#allocation3 + $0x7e]]  ;;  %p1799_p5 = pnand %p1798_p13, %p1993_p0 }
  0xee   : > { %v1073_v30 = vadd.f32 %v1072_v23, %v1049_v14  ;;  %v1084_v31 = vmul.f32 %v1565_v21, %v1083_v28  ;;  %v1089_v32 = vstv %s2569_s3  ;;  %s1580_s9 = sld [smem:[#allocation3 + $0x7f]]  ;;  %s1801_s14 = sshll.u32 %s1896_s17, 4  ;;  %s1802_s14 = int_to_ptr.vmem [resolvable:$false] %s1801_s14 }
  0xef   : > { %v1079_v34 = vadd.f32 %v1078_v27, %v1055_v18  ;;  %v1090_v35 = vmul.f32 %v1567_v25, %v1089_v32  ;;  %v1095_v36 = vstv %s2573_s26  ;;  %s1131_s30 = sld [smem:[#allocation4]]  ;;  %p1800_p8 = pneg %p1799_p5 }
  0xf0   : > { %v1085_v38 = vadd.f32 %v1084_v31, %v1061_v22  ;;  %v1096_v39 = vmul.f32 %v1569_v29, %v1095_v36  ;;  %v1101_v40 = vstv %s1572_s28  ;;  %s1803_s29 = scalar_lea.vmem %s1802_s14, 64  ;;  %p1804_p9 = scmp.lt.s32.totalorder %s1156_s13, %s1802_s14 }
  0xf1   : > { %v1091_v42 = vadd.f32 %v1090_v35, %v1067_v26  ;;  %v1102_v43 = vmul.f32 %v1571_v33, %v1101_v40  ;;  %v1107_v44 = vstv %s1574_s18  ;;  %p1805_p12 = scmp.lt.s32.totalorder %s1803_s29, %s1797_s12 }
  0xf2   : > { %v1097_v46 = vadd.f32 %v1096_v39, %v1073_v30  ;;  %v1108_v47 = vmul.f32 %v1573_v37, %v1107_v44  ;;  %v1113_v48 = vstv %s1576_s19 }
  0xf3   : > { %v1103_v50 = vadd.f32 %v1102_v43, %v1079_v34  ;;  %v1114_v51 = vmul.f32 %v1575_v41, %v1113_v48  ;;  %v1119_v52 = vstv %s1578_s21  ;;  %p1806_p1 = por %p1805_p12, %p1804_p9 }
  0xf4   : > { %v1109_v53 = vadd.f32 %v1108_v47, %v1085_v38  ;;  %v1120_v54 = vmul.f32 %v1577_v45, %v1119_v52  ;;  %v1125_v55 = vstv %s1580_s9 }
  0xf5   : > { %v1115_v56 = vadd.f32 %v1114_v51, %v1091_v42  ;;  %v1126_v57 = vmul.f32 %v1579_v49, %v1125_v55  ;;  %v1132_v62 = vstv %s1131_s30  ;;  %p1807_p4 = pnand %p1806_p1, %p1800_p8 }
  0xf6   : > { %v1121_v58 = vadd.f32 %v1120_v54, %v1097_v46 }
  0xf7   : > { %v1127_v59 = vadd.f32 %v1126_v57, %v1103_v50  ;;  %v1128_v60 = vadd.f32 %v1115_v56, %v1109_v53 }
  0xf9   : > { %v1129_v61 = vadd.f32 %v1127_v59, %v1121_v58 }
  0xfb   : > { %v1130_v63 = vadd.f32 %v1129_v61, %v1128_v60 }
  0xfd   : > { %v1133_v0 = vadd.f32 %v1132_v62, %v1130_v63 }
  0xff   : > { %v1134_v1 = vsub.f32 0.0, %v1133_v0 }
 0x101   : > { %v1135_v2 = vmul.f32 1.442695, %v1134_v1 }
 0x103   : > { %1669 = vpow2.f32 %v1135_v2 }
 0x110   : > { %v1670_v3 = vpop.eup %1669 }
 0x111   : > { %v1137_v4 = vadd.f32 1.0, %v1670_v3 }
 0x113   : > { %1671 = vrcp.f32 %v1137_v4 }
 0x120   : > { %v1672_v5 = vpop.eup %1671 }
 0x121   : > { %1139 = vst [vmem:[%s367_s8] sm:$0x3] %v1672_v5 }
 0x122   : > { %1810 = shalt.err (!%p1807_p4)
}
 0x123   : > { %s1811_s24 = scalar_lea.hbm %s2595_s20, 32  ;;  %s1815_s3 = scalar_lea.hbm %s2643_s6, 64 }
 0x124   : > { %p1812_p3 = scmp.ne.s32.totalorder %s2595_s20, %s1811_s24  ;;  %p1816_p10 = scmp.lt.s32.totalorder %s2595_s20, %s2643_s6 }
 0x125   : > { %p1817_p11 = scmp.lt.s32.totalorder %s1815_s3, %s1811_s24 }
 0x126   : > { %p1813_p6 = pnand %p1812_p3, %p1993_p0 }
 0x127   : > { %p1818_p13 = por %p1817_p11, %p1816_p10 }
 0x128   : > { %p1814_p7 = pneg %p1813_p6 }
 0x12a   : > { %p1819_p5 = pnand %p1818_p13, %p1814_p7 }
 0x12c   : > { %1822 = shalt.err (!%p1819_p5)
}
 0x12d   : > { %1597 = dma.vmem_to_hbm [thread:$0]  (%p1993_p0), %s1156_s13, 32, %s2595_s20, %s1141_s10  }
 0x12e PF: > { %s1167_s19 = sand.u32 1, %s1867_s0   ;;  %p2665_p8 = scmp.ge.s32.totalorder %s1887_s7, 2 }
 0x12f   : > { %s1168_s21 = scalar_lea.sflag [#allocation7], %s1167_s19 }
 0x130   : > { %p1613_p9 = pnand %p2665_p8, %p2000_p2 }
 0x132   : > { %p1614_p12 = pneg %p1613_p9 }
 0x134   : > { %1862 = dma.done.wait (%p1614_p12), %s1168_s21, 32  }
 0x135   : > { %1864 = vsyncadd (%p1614_p12), %s1168_s21, 4294967264  ;;  %s35_s7 = sadd.s32 1, %s1887_s7   ;;  %s2666_s9 = sld [smem:[#allocation19_spill]] }
 0x136   : > { %p32_p1 = scmp.ge.s32.totalorder %s35_s7, 4   ;;  %s2667_s28 = sld [smem:[#allocation22_spill]] }
 0x137   : > { %s2668_s29 = sld [smem:[#allocation20_spill]]  ;;  %s2670_s0 = smov %s1871_s1 }
 0x138   : > { %s2669_s30 = sld [smem:[#allocation21_spill]]  ;;  %34 = sbr.rel (!%p32_p1) target bundleno = 26 (0x1a), region = 242 }
 0x13b   : > { %s2671_s1 = smov %s2666_s9 }
 0x13d   :  { %1173 = vsyncpa [#allocation6], 1 }
 0x13e   :  { %1175 = vsyncpa [#allocation6 + $0x1], 1 }
 0x13f   :  { %1176 = vsyncpa [#allocation9], 1 }
 0x140   :  { %1178 = vsyncpa [#allocation9 + $0x1], 1 }
 0x141   :  { %1179 = vsyncpa [#allocation12], 1 }
 0x142   :  { %1181 = vsyncpa [#allocation12 + $0x1], 1 }
 0x143   :  { %1182 = vsyncpa [#allocation7], 1 }
 0x144   :  { %1184 = vsyncpa [#allocation7 + $0x1], 1 }

</bundles_post_ra>
